<compile_context>
chip_gen: v6e
topology: v6e:2x2x1
jax: 0.10.0
libtpu: 0.0.40
codegen_flags: <defaults>
</compile_context>

<pallas_src>
import functools
import math

import jax
import jax.numpy as jnp
from jax import lax
from jax.experimental import pallas as pl
from jax.experimental.pallas import tpu as pltpu


# ----------------------------- model config ---------------------------------
VOCAB_SIZE = 64
BLOCK_SIZE = 16                    # max context
N_EMBD = 32
N_LAYER = 2
N_HEAD = 4
HEAD_DIM = N_EMBD // N_HEAD
DROPOUT = 0.0                      # inference: dropout = identity
LN_EPS = 1e-6                      # matches the custom LayerNorm (F.layer_norm eps=1e-06)
D_FF = int(8 / 3 * N_EMBD)         # SwiGLUFFN: int(8/3 * 32) = 85
D_PAD = 128                        # D_FF zero-padded to one full vreg lane width
QKV_PAD = 128                      # fused q|k|v output (3*C = 96) padded to 128 lanes
V_PAD = 128                        # lm_head output padded to lane-dense width


# ----------------------------- fused forward kernel -------------------------
def _gpt_fused_kernel(x_ref, mask_ref, wqkv_ref, bqkv_ref, wproj_ref,
                      wfc1_ref, bfc1_ref, wfc2_ref, vecs_ref, wlm_ref, o_ref,
                      *, n_layer, n_head, n_embd, head_dim):
    f32, bf16 = jnp.float32, jnp.bfloat16
    C, H, hd = n_embd, n_head, head_dim

    def mm(a, b):
        # MXU matmul: bf16 inputs, f32 accumulation.
        return jnp.dot(a.astype(bf16), b.astype(bf16), preferred_element_type=f32)

    def mm_nt(a, b):
        # a @ b.T without materializing a transpose (contract dim 1 of both).
        return lax.dot_general(a.astype(bf16), b.astype(bf16),
                               (((1,), (1,)), ((), ())),
                               preferred_element_type=f32)

    def layernorm(v, w, bias):
        mu = jnp.mean(v, axis=-1, keepdims=True)
        vc = v - mu
        var = jnp.mean(vc * vc, axis=-1, keepdims=True)
        return vc * lax.rsqrt(var + LN_EPS) * w + bias

    mask_bias = mask_ref[...]              # (R, R) block-diag causal additive bias
    x = x_ref[...]                         # (R, C) f32 residual rows (batch folded)

    # Per-head lane-selection masks over the C model lanes (hoisted: reused each layer).
    lane = lax.broadcasted_iota(jnp.int32, (1, C), 1)
    head_mask = [((lane >= h * hd) & (lane < (h + 1) * hd)).astype(f32)
                 for h in range(H)]

    for l in range(n_layer):               # static unroll (tiny L)
        vv = vecs_ref[l]                   # (8, C) packed per-layer vectors
        ln1_w, ln1_b = vv[0:1], vv[1:2]
        ln2_w, ln2_b = vv[2:3], vv[3:4]
        b_proj, b_fc2 = vv[4:5], vv[5:6]

        # -------------------- causal self-attention --------------------
        h1 = layernorm(x, ln1_w, ln1_b).astype(bf16)        # one cast, one use
        qkv = jnp.dot(h1, wqkv_ref[l], preferred_element_type=f32) + bqkv_ref[l]
        q_all = qkv[:, 0 * C:1 * C]        # (R, C); softmax scale already folded into W_q
        k_all = qkv[:, 1 * C:2 * C]
        v_all = qkv[:, 2 * C:3 * C]

        y = jnp.zeros_like(x)              # (R, C) f32 head-output accumulator
        for h in range(H):                 # static unroll (tiny H)
            # Lane-masked Q keeps only head h's lanes => contraction == q_h @ k_h^T.
            s = mm_nt(q_all * head_mask[h], k_all) + mask_bias
            s = s - jnp.max(s, axis=-1, keepdims=True)
            p = jnp.exp(s)
            p = p * pl.reciprocal(jnp.sum(p, axis=-1, keepdims=True), approx=True)
            # Lane-masked V drops head h's output into its own lanes of y.
            y = y + mm(p, v_all * head_mask[h])
        x = x + mm(y, wproj_ref[l]) + b_proj                # single (C, C) out-projection

        # -------------------- SwiGLU FFN --------------------
        h2 = layernorm(x, ln2_w, ln2_b).astype(bf16)
        u = jnp.dot(h2, wfc1_ref[l], preferred_element_type=f32) + bfc1_ref[l]  # (R, 256)
        x1 = u[:, :D_PAD]                  # gate  (128-lane aligned slice)
        x2 = u[:, D_PAD:]                  # value
        g = x1 * jax.nn.sigmoid(x1) * x2   # f32 elementwise (v5e-safe)
        x = x + mm(g, wfc2_ref[l]) + b_fc2

    # -------------------- final LayerNorm + lm_head --------------------
    lnf = vecs_ref[n_layer]
    hf = layernorm(x, lnf[0:1], lnf[1:2]).astype(bf16)
    o_ref[...] = jnp.dot(hf, wlm_ref[...], preferred_element_type=f32)  # lane-dense store


# ----------------------------- pallas_call builder ---------------------------
def _cost_estimate(n_steps, R):
    C, H, L = N_EMBD, N_HEAD, N_LAYER
    per_step_flops = L * (
        2 * R * C * QKV_PAD            # fused QKV
        + H * 2 * R * R * C            # masked per-head scores
        + H * 2 * R * R * C            # masked per-head PV
        + 2 * R * C * C                # out-projection
        + 2 * R * C * 2 * D_PAD        # fused SwiGLU fc1
        + 2 * R * D_PAD * C            # SwiGLU fc2
    ) + 2 * R * C * V_PAD              # lm_head
    per_step_transc = L * (H * R * R + R * D_PAD + H * R) + (2 * L + 1) * R
    weight_bytes = (L * C * QKV_PAD * 2 + L * QKV_PAD * 4 + L * C * C * 2
                    + L * C * 2 * D_PAD * 2 + L * 2 * D_PAD * 4 + L * D_PAD * C * 2
                    + (L + 1) * 8 * C * 4 + C * V_PAD * 2 + R * R * 4)
    io_bytes = n_steps * R * (C + V_PAD) * 4
    return pl.CostEstimate(flops=int(n_steps * per_step_flops),
                           transcendentals=int(n_steps * per_step_transc),
                           bytes_accessed=int(weight_bytes + io_bytes))


def make_gpt_call(n_steps, rows_per_step):
    C, L = N_EMBD, N_LAYER
    R = rows_per_step
    kernel = functools.partial(_gpt_fused_kernel, n_layer=L, n_head=N_HEAD,
                               n_embd=C, head_dim=HEAD_DIM)

    def const_spec(shape):
        rank = len(shape)
        return pl.BlockSpec(shape, lambda b, _r=rank: (0,) * _r)

    in_specs = [
        pl.BlockSpec((R, C), lambda b: (b, 0)),    # residual rows for this grid step
        const_spec((R, R)),                        # block-diag causal additive bias (f32)
        const_spec((L, C, QKV_PAD)),               # fused q|k|v weights (bf16)
        const_spec((L, 1, QKV_PAD)),               # fused q|k|v bias   (f32)
        const_spec((L, C, C)),                     # out-proj weights   (bf16)
        const_spec((L, C, 2 * D_PAD)),             # fused SwiGLU gate|value weights (bf16)
        const_spec((L, 1, 2 * D_PAD)),             # fused SwiGLU bias  (f32)
        const_spec((L, D_PAD, C)),                 # SwiGLU fc2 (padded rows, bf16)
        const_spec((L + 1, 8, C)),                 # LN gains/biases + proj/fc2 biases
        const_spec((C, V_PAD)),                    # lm_head (padded cols, bf16)
    ]
    out_spec = pl.BlockSpec((R, V_PAD), lambda b: (b, 0))

    return pl.pallas_call(
        kernel,
        out_shape=jax.ShapeDtypeStruct((n_steps * R, V_PAD), jnp.float32),
        grid=(n_steps,),
        in_specs=in_specs,
        out_specs=out_spec,
        compiler_params=pltpu.CompilerParams(dimension_semantics=("parallel",)),
        cost_estimate=_cost_estimate(n_steps, R),
    )


# ----------------------------- parameter construction -----------------------
def init_params(key):
    """Torch-layout synthetic weights matching GPT._init_weights:
       Linear / Embedding weights ~ N(0, 0.02); Linear biases = 0;
       LayerNorm weight = 1, bias = 0 (bias=True default in GPT).
       Note: this GPT spec does NOT tie lm_head to wte."""
    def nrm(k, shape):
        return 0.02 * jax.random.normal(k, shape, dtype=jnp.float32)

    keys = jax.random.split(key, 2 + 4 * N_LAYER)
    params = {
        "wte": nrm(keys[0], (VOCAB_SIZE, N_EMBD)),
        "lm_head": nrm(keys[1], (VOCAB_SIZE, N_EMBD)),   # torch (vocab, n_embd)
        "ln_f_w": jnp.ones((N_EMBD,), jnp.float32),
        "ln_f_b": jnp.zeros((N_EMBD,), jnp.float32),
        "blocks": [],
    }
    for li in range(N_LAYER):
        k0, k1, k2, k3 = keys[2 + 4 * li: 6 + 4 * li]
        params["blocks"].append({
            "ln1_w": jnp.ones((N_EMBD,), jnp.float32),
            "ln1_b": jnp.zeros((N_EMBD,), jnp.float32),
            "w_attn": nrm(k0, (3 * N_EMBD, N_EMBD)),     # torch c_attn (3C, C)
            "b_attn": jnp.zeros((3 * N_EMBD,), jnp.float32),
            "w_proj": nrm(k1, (N_EMBD, N_EMBD)),         # torch c_proj (C, C)
            "b_proj": jnp.zeros((N_EMBD,), jnp.float32),
            "ln2_w": jnp.ones((N_EMBD,), jnp.float32),
            "ln2_b": jnp.zeros((N_EMBD,), jnp.float32),
            "w_fc1": nrm(k2, (2 * D_FF, N_EMBD)),        # torch fc1 (2*dff, C)
            "b_fc1": jnp.zeros((2 * D_FF,), jnp.float32),
            "w_fc2": nrm(k3, (N_EMBD, D_FF)),            # torch fc2 (C, dff)
            "b_fc2": jnp.zeros((N_EMBD,), jnp.float32),
        })
    return params


def _pad_cols(a, n):
    return jnp.pad(a, ((0, 0), (0, n - a.shape[-1])))


def pack_params(params):
    """One-time repack of torch-layout params into kernel-friendly lane-dense slabs:
       fused q|k|v (scale folded into Q), full out-proj, fused gate|value SwiGLU,
       zero-padded fc2 / lm_head, and a single (8, C) vector slab per layer."""
    C, L = N_EMBD, N_LAYER
    bf16 = jnp.bfloat16
    scale = 1.0 / math.sqrt(HEAD_DIM)
    zC = jnp.zeros((C,), jnp.float32)

    w_qkv, b_qkv, w_proj, w_fc1, b_fc1, w_fc2, vecs = [], [], [], [], [], [], []
    for blk in params["blocks"]:
        wa = blk["w_attn"].T                             # (C, 3C): x @ wa == torch Linear
        ba = blk["b_attn"]                               # (3C,)
        wa = wa.at[:, :C].multiply(scale)                # fold 1/sqrt(hd) into Q weights
        ba = ba.at[:C].multiply(scale)                   # ... and Q bias
        w_qkv.append(_pad_cols(wa, QKV_PAD))             # (C, 128)
        b_qkv.append(_pad_cols(ba.reshape(1, -1), QKV_PAD))

        w_proj.append(blk["w_proj"].T)                   # (C, C)

        w1t = blk["w_fc1"].T                             # (C, 2*dff)
        gate = _pad_cols(w1t[:, :D_FF], D_PAD)           # (C, 128)
        val = _pad_cols(w1t[:, D_FF:], D_PAD)            # (C, 128)
        w_fc1.append(jnp.concatenate([gate, val], axis=1))           # (C, 256)
        b1 = blk["b_fc1"]
        b_fc1.append(jnp.concatenate(
            [_pad_cols(b1[:D_FF].reshape(1, -1), D_PAD),
             _pad_cols(b1[D_FF:].reshape(1, -1), D_PAD)], axis=1))   # (1, 256)

        w_fc2.append(jnp.pad(blk["w_fc2"].T, ((0, D_PAD - D_FF), (0, 0))))  # (128, C)

        vecs.append(jnp.stack([blk["ln1_w"], blk["ln1_b"], blk["ln2_w"], blk["ln2_b"],
                               blk["b_proj"], blk["b_fc2"], zC, zC]))
    vecs.append(jnp.stack([params["ln_f_w"], params["ln_f_b"]] + [zC] * 6))

    w_lm = _pad_cols(params["lm_head"].T, V_PAD)         # (C, 128)

    return {
        "wte": params["wte"],                            # f32 (gather in wrapper)
        "w_qkv": jnp.stack(w_qkv).astype(bf16),          # (L, C, 128)
        "b_qkv": jnp.stack(b_qkv).astype(jnp.float32),   # (L, 1, 128)
        "w_proj": jnp.stack(w_proj).astype(bf16),        # (L, C, C)
        "w_fc1": jnp.stack(w_fc1).astype(bf16),          # (L, C, 256)
        "b_fc1": jnp.stack(b_fc1).astype(jnp.float32),   # (L, 1, 256)
        "w_fc2": jnp.stack(w_fc2).astype(bf16),          # (L, 128, C)
        "vecs": jnp.stack(vecs).astype(jnp.float32),     # (L+1, 8, C)
        "w_lm": w_lm.astype(bf16),                       # (C, 128)
    }


# ----------------------------- full forward ---------------------------------
def gpt_forward(packed, idx):
    """idx: (B, T) int32 token ids. Returns (logits (B, T, vocab), loss=None)."""
    B, T = idx.shape
    assert T <= BLOCK_SIZE

    # Fold batch rows into the matmul M dimension; keep grid length a multiple of 2 so
    # v7x's two TensorCores both get work (v5e/v6e: single TC, indifferent).
    n_steps = 2 if (B % 2 == 0 and B >= 2) else 1
    R = (B // n_steps) * T
    if n_steps > 1 and R % 8 != 0:       # keep the (8,128) block rule satisfied
        n_steps, R = 1, B * T

    tok_emb = jnp.take(packed["wte"], idx, axis=0)       # (B, T, C) glue gather
    x = tok_emb.reshape(B * T, N_EMBD)                   # dropout (p=0 / eval) = identity

    # Block-diagonal causal additive bias (one T x T causal block per folded sequence).
    r = jnp.arange(R, dtype=jnp.int32)
    allowed = (r[None, :] <= r[:, None]) & ((r[:, None] // T) == (r[None, :] // T))
    mask_bias = jnp.where(allowed, 0.0, -1e30).astype(jnp.float32)

    call = make_gpt_call(n_steps, R)
    logits_pad = call(x, mask_bias,
                      packed["w_qkv"], packed["b_qkv"], packed["w_proj"],
                      packed["w_fc1"], packed["b_fc1"], packed["w_fc2"],
                      packed["vecs"], packed["w_lm"])    # (B*T, V_PAD)

    logits = logits_pad[:, :VOCAB_SIZE].reshape(B, T, VOCAB_SIZE)
    # TODO(synk): targets / cross-entropy loss path not implemented (targets=None only).
    return logits, None


# ----------------------------- main ------------------------------------------
if __name__ == "__main__":
    key = jax.random.PRNGKey(0)
    pkey, ikey = jax.random.split(key)

    params = init_params(pkey)
    packed = pack_params(params)

    B, T = 4, 8            # 2 grid steps x 2 folded sequences (16 rows) per step
    idx = jax.random.randint(ikey, (B, T), 0, VOCAB_SIZE, dtype=jnp.int32)

    fwd = jax.jit(gpt_forward)
    logits, loss = fwd(packed, idx)
    logits = jax.block_until_ready(logits)

    assert logits.shape == (B, T, VOCAB_SIZE)
    assert bool(jnp.all(jnp.isfinite(logits)))
    print("KERNEL_OK")
</pallas_src>

<mosaic_0001>
module attributes {stable_mosaic.version = 11 : i64} {
  func.func @_gpt_fused_kernel(%arg0: i32, %arg1: memref<16x32xf32, #tpu.memory_space<vmem>>, %arg2: memref<16x16xf32, #tpu.memory_space<vmem>>, %arg3: memref<2x32x128xbf16, #tpu.memory_space<vmem>>, %arg4: memref<2x1x128xf32, #tpu.memory_space<vmem>>, %arg5: memref<2x32x32xbf16, #tpu.memory_space<vmem>>, %arg6: memref<2x32x256xbf16, #tpu.memory_space<vmem>>, %arg7: memref<2x1x256xf32, #tpu.memory_space<vmem>>, %arg8: memref<2x128x32xbf16, #tpu.memory_space<vmem>>, %arg9: memref<3x8x32xf32, #tpu.memory_space<vmem>>, %arg10: memref<32x128xbf16, #tpu.memory_space<vmem>>, %arg11: memref<16x128xf32, #tpu.memory_space<vmem>>) attributes {dimension_semantics = [#tpu.dimension_semantics<parallel>], iteration_bounds = array<i64: 2>, scalar_prefetch = 0 : i64, scratch_operands = 0 : i64, tpu.core_type = #tpu.core_type<tc>, window_params = [{transform_indices = @transform_0, window_bounds = array<i64: 16, 32>}, {pipeline_mode = #tpu.pipeline_mode<synchronous>, transform_indices = @transform_1, window_bounds = array<i64: 16, 16>}, {pipeline_mode = #tpu.pipeline_mode<synchronous>, transform_indices = @transform_2, window_bounds = array<i64: 2, 32, 128>}, {pipeline_mode = #tpu.pipeline_mode<synchronous>, transform_indices = @transform_3, window_bounds = array<i64: 2, 1, 128>}, {pipeline_mode = #tpu.pipeline_mode<synchronous>, transform_indices = @transform_4, window_bounds = array<i64: 2, 32, 32>}, {pipeline_mode = #tpu.pipeline_mode<synchronous>, transform_indices = @transform_5, window_bounds = array<i64: 2, 32, 256>}, {pipeline_mode = #tpu.pipeline_mode<synchronous>, transform_indices = @transform_6, window_bounds = array<i64: 2, 1, 256>}, {pipeline_mode = #tpu.pipeline_mode<synchronous>, transform_indices = @transform_7, window_bounds = array<i64: 2, 128, 32>}, {pipeline_mode = #tpu.pipeline_mode<synchronous>, transform_indices = @transform_8, window_bounds = array<i64: 3, 8, 32>}, {pipeline_mode = #tpu.pipeline_mode<synchronous>, transform_indices = @transform_9, window_bounds = array<i64: 32, 128>}, {transform_indices = @transform_10, window_bounds = array<i64: 16, 128>}]} {
    %c0 = arith.constant 0 : index
    %c0_0 = arith.constant 0 : index
    %0 = vector.load %arg2[%c0, %c0_0] : memref<16x16xf32, #tpu.memory_space<vmem>>, vector<16x16xf32>
    %c0_1 = arith.constant 0 : index
    %c0_2 = arith.constant 0 : index
    %1 = vector.load %arg1[%c0_1, %c0_2] : memref<16x32xf32, #tpu.memory_space<vmem>>, vector<16x32xf32>
    %2 = tpu.iota {dimensions = array<i32: 1>} : vector<1x32xi32>
    %c0_i32 = arith.constant 0 : i32
    %3 = vector.broadcast %c0_i32 : i32 to vector<1x32xi32>
    %4 = arith.cmpi sge, %2, %3 : vector<1x32xi32>
    %c8_i32 = arith.constant 8 : i32
    %5 = vector.broadcast %c8_i32 : i32 to vector<1x32xi32>
    %6 = arith.cmpi slt, %2, %5 : vector<1x32xi32>
    %7 = arith.andi %4, %6 : vector<1x32xi1>
    %8 = arith.extui %7 : vector<1x32xi1> to vector<1x32xi32>
    %9 = arith.sitofp %8 : vector<1x32xi32> to vector<1x32xf32>
    %c8_i32_3 = arith.constant 8 : i32
    %10 = vector.broadcast %c8_i32_3 : i32 to vector<1x32xi32>
    %11 = arith.cmpi sge, %2, %10 : vector<1x32xi32>
    %c16_i32 = arith.constant 16 : i32
    %12 = vector.broadcast %c16_i32 : i32 to vector<1x32xi32>
    %13 = arith.cmpi slt, %2, %12 : vector<1x32xi32>
    %14 = arith.andi %11, %13 : vector<1x32xi1>
    %15 = arith.extui %14 : vector<1x32xi1> to vector<1x32xi32>
    %16 = arith.sitofp %15 : vector<1x32xi32> to vector<1x32xf32>
    %c16_i32_4 = arith.constant 16 : i32
    %17 = vector.broadcast %c16_i32_4 : i32 to vector<1x32xi32>
    %18 = arith.cmpi sge, %2, %17 : vector<1x32xi32>
    %c24_i32 = arith.constant 24 : i32
    %19 = vector.broadcast %c24_i32 : i32 to vector<1x32xi32>
    %20 = arith.cmpi slt, %2, %19 : vector<1x32xi32>
    %21 = arith.andi %18, %20 : vector<1x32xi1>
    %22 = arith.extui %21 : vector<1x32xi1> to vector<1x32xi32>
    %23 = arith.sitofp %22 : vector<1x32xi32> to vector<1x32xf32>
    %c24_i32_5 = arith.constant 24 : i32
    %24 = vector.broadcast %c24_i32_5 : i32 to vector<1x32xi32>
    %25 = arith.cmpi sge, %2, %24 : vector<1x32xi32>
    %c32_i32 = arith.constant 32 : i32
    %26 = vector.broadcast %c32_i32 : i32 to vector<1x32xi32>
    %27 = arith.cmpi slt, %2, %26 : vector<1x32xi32>
    %28 = arith.andi %25, %27 : vector<1x32xi1>
    %29 = arith.extui %28 : vector<1x32xi1> to vector<1x32xi32>
    %30 = arith.sitofp %29 : vector<1x32xi32> to vector<1x32xf32>
    %c0_6 = arith.constant 0 : index
    %c0_7 = arith.constant 0 : index
    %c0_8 = arith.constant 0 : index
    %31 = vector.load %arg9[%c0_6, %c0_7, %c0_8] : memref<3x8x32xf32, #tpu.memory_space<vmem>>, vector<1x8x32xf32>
    %32 = vector.shape_cast %31 : vector<1x8x32xf32> to vector<8x32xf32>
    %33 = vector.extract_strided_slice %32 {offsets = [0, 0], sizes = [1, 32], strides = [1, 1]} : vector<8x32xf32> to vector<1x32xf32>
    %34 = vector.extract_strided_slice %32 {offsets = [1, 0], sizes = [1, 32], strides = [1, 1]} : vector<8x32xf32> to vector<1x32xf32>
    %35 = vector.extract_strided_slice %32 {offsets = [2, 0], sizes = [1, 32], strides = [1, 1]} : vector<8x32xf32> to vector<1x32xf32>
    %36 = vector.extract_strided_slice %32 {offsets = [3, 0], sizes = [1, 32], strides = [1, 1]} : vector<8x32xf32> to vector<1x32xf32>
    %37 = vector.extract_strided_slice %32 {offsets = [4, 0], sizes = [1, 32], strides = [1, 1]} : vector<8x32xf32> to vector<1x32xf32>
    %38 = vector.extract_strided_slice %32 {offsets = [5, 0], sizes = [1, 32], strides = [1, 1]} : vector<8x32xf32> to vector<1x32xf32>
    %cst = arith.constant dense<0.000000e+00> : vector<16xf32>
    %39 = vector.multi_reduction <add>, %1, %cst [1] : vector<16x32xf32> to vector<16xf32>
    %40 = vector.shape_cast %39 : vector<16xf32> to vector<16x1xf32>
    %cst_9 = arith.constant 3.200000e+01 : f32
    %41 = vector.broadcast %cst_9 : f32 to vector<16x1xf32>
    %42 = arith.divf %40, %41 : vector<16x1xf32>
    %43 = vector.broadcast %42 : vector<16x1xf32> to vector<16x32xf32>
    %44 = arith.subf %1, %43 : vector<16x32xf32>
    %45 = arith.mulf %44, %44 : vector<16x32xf32>
    %cst_10 = arith.constant dense<0.000000e+00> : vector<16xf32>
    %46 = vector.multi_reduction <add>, %45, %cst_10 [1] : vector<16x32xf32> to vector<16xf32>
    %47 = vector.shape_cast %46 : vector<16xf32> to vector<16x1xf32>
    %cst_11 = arith.constant 3.200000e+01 : f32
    %48 = vector.broadcast %cst_11 : f32 to vector<16x1xf32>
    %49 = arith.divf %47, %48 : vector<16x1xf32>
    %cst_12 = arith.constant 9.99999997E-7 : f32
    %50 = vector.broadcast %cst_12 : f32 to vector<16x1xf32>
    %51 = arith.addf %49, %50 : vector<16x1xf32>
    %52 = math.rsqrt %51 : vector<16x1xf32>
    %53 = vector.broadcast %52 : vector<16x1xf32> to vector<16x32xf32>
    %54 = arith.mulf %44, %53 : vector<16x32xf32>
    %55 = vector.broadcast %33 : vector<1x32xf32> to vector<16x32xf32>
    %56 = arith.mulf %54, %55 : vector<16x32xf32>
    %57 = vector.broadcast %34 : vector<1x32xf32> to vector<16x32xf32>
    %58 = arith.addf %56, %57 : vector<16x32xf32>
    %59 = arith.truncf %58 : vector<16x32xf32> to vector<16x32xbf16>
    %c0_13 = arith.constant 0 : index
    %c0_14 = arith.constant 0 : index
    %c0_15 = arith.constant 0 : index
    %60 = vector.load %arg3[%c0_13, %c0_14, %c0_15] : memref<2x32x128xbf16, #tpu.memory_space<vmem>>, vector<1x32x128xbf16>
    %61 = vector.shape_cast %60 : vector<1x32x128xbf16> to vector<32x128xbf16>
    %cst_16 = arith.constant dense<0.000000e+00> : vector<16x128xf32>
    %62 = tpu.matmul %59, %61, %cst_16 {dimension_numbers = #tpu.dot_dimension_numbers<[1], [0], [0], [1], [0, 0, 1, 1], [], []>} : vector<16x32xbf16>, vector<32x128xbf16>, vector<16x128xf32> -> vector<16x128xf32>
    %c0_17 = arith.constant 0 : index
    %c0_18 = arith.constant 0 : index
    %c0_19 = arith.constant 0 : index
    %63 = vector.load %arg4[%c0_17, %c0_18, %c0_19] : memref<2x1x128xf32, #tpu.memory_space<vmem>>, vector<1x1x128xf32>
    %64 = vector.shape_cast %63 : vector<1x1x128xf32> to vector<1x128xf32>
    %65 = vector.broadcast %64 : vector<1x128xf32> to vector<16x128xf32>
    %66 = arith.addf %62, %65 : vector<16x128xf32>
    %67 = vector.extract_strided_slice %66 {offsets = [0, 0], sizes = [16, 32], strides = [1, 1]} : vector<16x128xf32> to vector<16x32xf32>
    %68 = vector.extract_strided_slice %66 {offsets = [0, 32], sizes = [16, 32], strides = [1, 1]} : vector<16x128xf32> to vector<16x32xf32>
    %69 = vector.extract_strided_slice %66 {offsets = [0, 64], sizes = [16, 32], strides = [1, 1]} : vector<16x128xf32> to vector<16x32xf32>
    %cst_20 = arith.constant 0.000000e+00 : f32
    %70 = vector.broadcast %cst_20 : f32 to vector<16x32xf32>
    %71 = vector.broadcast %9 : vector<1x32xf32> to vector<16x32xf32>
    %72 = arith.mulf %67, %71 : vector<16x32xf32>
    %73 = arith.truncf %72 : vector<16x32xf32> to vector<16x32xbf16>
    %74 = arith.truncf %68 : vector<16x32xf32> to vector<16x32xbf16>
    %cst_21 = arith.constant dense<0.000000e+00> : vector<16x16xf32>
    %75 = tpu.matmul %73, %74, %cst_21 {dimension_numbers = #tpu.dot_dimension_numbers<[1], [1], [0], [0], [0, 0, 1, 0], [], []>} : vector<16x32xbf16>, vector<16x32xbf16>, vector<16x16xf32> -> vector<16x16xf32>
    %76 = arith.addf %75, %0 : vector<16x16xf32>
    %cst_22 = arith.constant dense<0xFF800000> : vector<16xf32>
    %77 = vector.multi_reduction <maximumf>, %76, %cst_22 [1] : vector<16x16xf32> to vector<16xf32>
    %78 = vector.shape_cast %77 : vector<16xf32> to vector<16x1xf32>
    %79 = vector.broadcast %78 : vector<16x1xf32> to vector<16x16xf32>
    %80 = arith.subf %76, %79 : vector<16x16xf32>
    %81 = math.exp %80 : vector<16x16xf32>
    %cst_23 = arith.constant dense<0.000000e+00> : vector<16xf32>
    %82 = vector.multi_reduction <add>, %81, %cst_23 [1] : vector<16x16xf32> to vector<16xf32>
    %83 = vector.shape_cast %82 : vector<16xf32> to vector<16x1xf32>
    %84 = tpu.reciprocal %83 {approx = true} : vector<16x1xf32> -> vector<16x1xf32>
    %85 = vector.broadcast %84 : vector<16x1xf32> to vector<16x16xf32>
    %86 = arith.mulf %81, %85 : vector<16x16xf32>
    %87 = vector.broadcast %9 : vector<1x32xf32> to vector<16x32xf32>
    %88 = arith.mulf %69, %87 : vector<16x32xf32>
    %89 = arith.truncf %86 : vector<16x16xf32> to vector<16x16xbf16>
    %90 = arith.truncf %88 : vector<16x32xf32> to vector<16x32xbf16>
    %cst_24 = arith.constant dense<0.000000e+00> : vector<16x32xf32>
    %91 = tpu.matmul %89, %90, %cst_24 {dimension_numbers = #tpu.dot_dimension_numbers<[1], [0], [0], [1], [0, 0, 1, 1], [], []>} : vector<16x16xbf16>, vector<16x32xbf16>, vector<16x32xf32> -> vector<16x32xf32>
    %92 = arith.addf %70, %91 : vector<16x32xf32>
    %93 = vector.broadcast %16 : vector<1x32xf32> to vector<16x32xf32>
    %94 = arith.mulf %67, %93 : vector<16x32xf32>
    %95 = arith.truncf %94 : vector<16x32xf32> to vector<16x32xbf16>
    %96 = arith.truncf %68 : vector<16x32xf32> to vector<16x32xbf16>
    %cst_25 = arith.constant dense<0.000000e+00> : vector<16x16xf32>
    %97 = tpu.matmul %95, %96, %cst_25 {dimension_numbers = #tpu.dot_dimension_numbers<[1], [1], [0], [0], [0, 0, 1, 0], [], []>} : vector<16x32xbf16>, vector<16x32xbf16>, vector<16x16xf32> -> vector<16x16xf32>
    %98 = arith.addf %97, %0 : vector<16x16xf32>
    %cst_26 = arith.constant dense<0xFF800000> : vector<16xf32>
    %99 = vector.multi_reduction <maximumf>, %98, %cst_26 [1] : vector<16x16xf32> to vector<16xf32>
    %100 = vector.shape_cast %99 : vector<16xf32> to vector<16x1xf32>
    %101 = vector.broadcast %100 : vector<16x1xf32> to vector<16x16xf32>
    %102 = arith.subf %98, %101 : vector<16x16xf32>
    %103 = math.exp %102 : vector<16x16xf32>
    %cst_27 = arith.constant dense<0.000000e+00> : vector<16xf32>
    %104 = vector.multi_reduction <add>, %103, %cst_27 [1] : vector<16x16xf32> to vector<16xf32>
    %105 = vector.shape_cast %104 : vector<16xf32> to vector<16x1xf32>
    %106 = tpu.reciprocal %105 {approx = true} : vector<16x1xf32> -> vector<16x1xf32>
    %107 = vector.broadcast %106 : vector<16x1xf32> to vector<16x16xf32>
    %108 = arith.mulf %103, %107 : vector<16x16xf32>
    %109 = vector.broadcast %16 : vector<1x32xf32> to vector<16x32xf32>
    %110 = arith.mulf %69, %109 : vector<16x32xf32>
    %111 = arith.truncf %108 : vector<16x16xf32> to vector<16x16xbf16>
    %112 = arith.truncf %110 : vector<16x32xf32> to vector<16x32xbf16>
    %cst_28 = arith.constant dense<0.000000e+00> : vector<16x32xf32>
    %113 = tpu.matmul %111, %112, %cst_28 {dimension_numbers = #tpu.dot_dimension_numbers<[1], [0], [0], [1], [0, 0, 1, 1], [], []>} : vector<16x16xbf16>, vector<16x32xbf16>, vector<16x32xf32> -> vector<16x32xf32>
    %114 = arith.addf %92, %113 : vector<16x32xf32>
    %115 = vector.broadcast %23 : vector<1x32xf32> to vector<16x32xf32>
    %116 = arith.mulf %67, %115 : vector<16x32xf32>
    %117 = arith.truncf %116 : vector<16x32xf32> to vector<16x32xbf16>
    %118 = arith.truncf %68 : vector<16x32xf32> to vector<16x32xbf16>
    %cst_29 = arith.constant dense<0.000000e+00> : vector<16x16xf32>
    %119 = tpu.matmul %117, %118, %cst_29 {dimension_numbers = #tpu.dot_dimension_numbers<[1], [1], [0], [0], [0, 0, 1, 0], [], []>} : vector<16x32xbf16>, vector<16x32xbf16>, vector<16x16xf32> -> vector<16x16xf32>
    %120 = arith.addf %119, %0 : vector<16x16xf32>
    %cst_30 = arith.constant dense<0xFF800000> : vector<16xf32>
    %121 = vector.multi_reduction <maximumf>, %120, %cst_30 [1] : vector<16x16xf32> to vector<16xf32>
    %122 = vector.shape_cast %121 : vector<16xf32> to vector<16x1xf32>
    %123 = vector.broadcast %122 : vector<16x1xf32> to vector<16x16xf32>
    %124 = arith.subf %120, %123 : vector<16x16xf32>
    %125 = math.exp %124 : vector<16x16xf32>
    %cst_31 = arith.constant dense<0.000000e+00> : vector<16xf32>
    %126 = vector.multi_reduction <add>, %125, %cst_31 [1] : vector<16x16xf32> to vector<16xf32>
    %127 = vector.shape_cast %126 : vector<16xf32> to vector<16x1xf32>
    %128 = tpu.reciprocal %127 {approx = true} : vector<16x1xf32> -> vector<16x1xf32>
    %129 = vector.broadcast %128 : vector<16x1xf32> to vector<16x16xf32>
    %130 = arith.mulf %125, %129 : vector<16x16xf32>
    %131 = vector.broadcast %23 : vector<1x32xf32> to vector<16x32xf32>
    %132 = arith.mulf %69, %131 : vector<16x32xf32>
    %133 = arith.truncf %130 : vector<16x16xf32> to vector<16x16xbf16>
    %134 = arith.truncf %132 : vector<16x32xf32> to vector<16x32xbf16>
    %cst_32 = arith.constant dense<0.000000e+00> : vector<16x32xf32>
    %135 = tpu.matmul %133, %134, %cst_32 {dimension_numbers = #tpu.dot_dimension_numbers<[1], [0], [0], [1], [0, 0, 1, 1], [], []>} : vector<16x16xbf16>, vector<16x32xbf16>, vector<16x32xf32> -> vector<16x32xf32>
    %136 = arith.addf %114, %135 : vector<16x32xf32>
    %137 = vector.broadcast %30 : vector<1x32xf32> to vector<16x32xf32>
    %138 = arith.mulf %67, %137 : vector<16x32xf32>
    %139 = arith.truncf %138 : vector<16x32xf32> to vector<16x32xbf16>
    %140 = arith.truncf %68 : vector<16x32xf32> to vector<16x32xbf16>
    %cst_33 = arith.constant dense<0.000000e+00> : vector<16x16xf32>
    %141 = tpu.matmul %139, %140, %cst_33 {dimension_numbers = #tpu.dot_dimension_numbers<[1], [1], [0], [0], [0, 0, 1, 0], [], []>} : vector<16x32xbf16>, vector<16x32xbf16>, vector<16x16xf32> -> vector<16x16xf32>
    %142 = arith.addf %141, %0 : vector<16x16xf32>
    %cst_34 = arith.constant dense<0xFF800000> : vector<16xf32>
    %143 = vector.multi_reduction <maximumf>, %142, %cst_34 [1] : vector<16x16xf32> to vector<16xf32>
    %144 = vector.shape_cast %143 : vector<16xf32> to vector<16x1xf32>
    %145 = vector.broadcast %144 : vector<16x1xf32> to vector<16x16xf32>
    %146 = arith.subf %142, %145 : vector<16x16xf32>
    %147 = math.exp %146 : vector<16x16xf32>
    %cst_35 = arith.constant dense<0.000000e+00> : vector<16xf32>
    %148 = vector.multi_reduction <add>, %147, %cst_35 [1] : vector<16x16xf32> to vector<16xf32>
    %149 = vector.shape_cast %148 : vector<16xf32> to vector<16x1xf32>
    %150 = tpu.reciprocal %149 {approx = true} : vector<16x1xf32> -> vector<16x1xf32>
    %151 = vector.broadcast %150 : vector<16x1xf32> to vector<16x16xf32>
    %152 = arith.mulf %147, %151 : vector<16x16xf32>
    %153 = vector.broadcast %30 : vector<1x32xf32> to vector<16x32xf32>
    %154 = arith.mulf %69, %153 : vector<16x32xf32>
    %155 = arith.truncf %152 : vector<16x16xf32> to vector<16x16xbf16>
    %156 = arith.truncf %154 : vector<16x32xf32> to vector<16x32xbf16>
    %cst_36 = arith.constant dense<0.000000e+00> : vector<16x32xf32>
    %157 = tpu.matmul %155, %156, %cst_36 {dimension_numbers = #tpu.dot_dimension_numbers<[1], [0], [0], [1], [0, 0, 1, 1], [], []>} : vector<16x16xbf16>, vector<16x32xbf16>, vector<16x32xf32> -> vector<16x32xf32>
    %158 = arith.addf %136, %157 : vector<16x32xf32>
    %c0_37 = arith.constant 0 : index
    %c0_38 = arith.constant 0 : index
    %c0_39 = arith.constant 0 : index
    %159 = vector.load %arg5[%c0_37, %c0_38, %c0_39] : memref<2x32x32xbf16, #tpu.memory_space<vmem>>, vector<1x32x32xbf16>
    %160 = vector.shape_cast %159 : vector<1x32x32xbf16> to vector<32x32xbf16>
    %161 = arith.truncf %158 : vector<16x32xf32> to vector<16x32xbf16>
    %cst_40 = arith.constant dense<0.000000e+00> : vector<16x32xf32>
    %162 = tpu.matmul %161, %160, %cst_40 {dimension_numbers = #tpu.dot_dimension_numbers<[1], [0], [0], [1], [0, 0, 1, 1], [], []>} : vector<16x32xbf16>, vector<32x32xbf16>, vector<16x32xf32> -> vector<16x32xf32>
    %163 = arith.addf %1, %162 : vector<16x32xf32>
    %164 = vector.broadcast %37 : vector<1x32xf32> to vector<16x32xf32>
    %165 = arith.addf %163, %164 : vector<16x32xf32>
    %cst_41 = arith.constant dense<0.000000e+00> : vector<16xf32>
    %166 = vector.multi_reduction <add>, %165, %cst_41 [1] : vector<16x32xf32> to vector<16xf32>
    %167 = vector.shape_cast %166 : vector<16xf32> to vector<16x1xf32>
    %cst_42 = arith.constant 3.200000e+01 : f32
    %168 = vector.broadcast %cst_42 : f32 to vector<16x1xf32>
    %169 = arith.divf %167, %168 : vector<16x1xf32>
    %170 = vector.broadcast %169 : vector<16x1xf32> to vector<16x32xf32>
    %171 = arith.subf %165, %170 : vector<16x32xf32>
    %172 = arith.mulf %171, %171 : vector<16x32xf32>
    %cst_43 = arith.constant dense<0.000000e+00> : vector<16xf32>
    %173 = vector.multi_reduction <add>, %172, %cst_43 [1] : vector<16x32xf32> to vector<16xf32>
    %174 = vector.shape_cast %173 : vector<16xf32> to vector<16x1xf32>
    %cst_44 = arith.constant 3.200000e+01 : f32
    %175 = vector.broadcast %cst_44 : f32 to vector<16x1xf32>
    %176 = arith.divf %174, %175 : vector<16x1xf32>
    %cst_45 = arith.constant 9.99999997E-7 : f32
    %177 = vector.broadcast %cst_45 : f32 to vector<16x1xf32>
    %178 = arith.addf %176, %177 : vector<16x1xf32>
    %179 = math.rsqrt %178 : vector<16x1xf32>
    %180 = vector.broadcast %179 : vector<16x1xf32> to vector<16x32xf32>
    %181 = arith.mulf %171, %180 : vector<16x32xf32>
    %182 = vector.broadcast %35 : vector<1x32xf32> to vector<16x32xf32>
    %183 = arith.mulf %181, %182 : vector<16x32xf32>
    %184 = vector.broadcast %36 : vector<1x32xf32> to vector<16x32xf32>
    %185 = arith.addf %183, %184 : vector<16x32xf32>
    %186 = arith.truncf %185 : vector<16x32xf32> to vector<16x32xbf16>
    %c0_46 = arith.constant 0 : index
    %c0_47 = arith.constant 0 : index
    %c0_48 = arith.constant 0 : index
    %187 = vector.load %arg6[%c0_46, %c0_47, %c0_48] : memref<2x32x256xbf16, #tpu.memory_space<vmem>>, vector<1x32x256xbf16>
    %188 = vector.shape_cast %187 : vector<1x32x256xbf16> to vector<32x256xbf16>
    %cst_49 = arith.constant dense<0.000000e+00> : vector<16x256xf32>
    %189 = tpu.matmul %186, %188, %cst_49 {dimension_numbers = #tpu.dot_dimension_numbers<[1], [0], [0], [1], [0, 0, 1, 1], [], []>} : vector<16x32xbf16>, vector<32x256xbf16>, vector<16x256xf32> -> vector<16x256xf32>
    %c0_50 = arith.constant 0 : index
    %c0_51 = arith.constant 0 : index
    %c0_52 = arith.constant 0 : index
    %190 = vector.load %arg7[%c0_50, %c0_51, %c0_52] : memref<2x1x256xf32, #tpu.memory_space<vmem>>, vector<1x1x256xf32>
    %191 = vector.shape_cast %190 : vector<1x1x256xf32> to vector<1x256xf32>
    %192 = vector.broadcast %191 : vector<1x256xf32> to vector<16x256xf32>
    %193 = arith.addf %189, %192 : vector<16x256xf32>
    %194 = vector.extract_strided_slice %193 {offsets = [0, 0], sizes = [16, 128], strides = [1, 1]} : vector<16x256xf32> to vector<16x128xf32>
    %195 = vector.extract_strided_slice %193 {offsets = [0, 128], sizes = [16, 128], strides = [1, 1]} : vector<16x256xf32> to vector<16x128xf32>
    %196 = arith.negf %194 : vector<16x128xf32>
    %197 = math.exp %196 : vector<16x128xf32>
    %cst_53 = arith.constant 1.000000e+00 : f32
    %198 = vector.broadcast %cst_53 : f32 to vector<16x128xf32>
    %199 = arith.addf %198, %197 : vector<16x128xf32>
    %200 = arith.divf %198, %199 : vector<16x128xf32>
    %201 = arith.mulf %194, %200 : vector<16x128xf32>
    %202 = arith.mulf %201, %195 : vector<16x128xf32>
    %c0_54 = arith.constant 0 : index
    %c0_55 = arith.constant 0 : index
    %c0_56 = arith.constant 0 : index
    %203 = vector.load %arg8[%c0_54, %c0_55, %c0_56] : memref<2x128x32xbf16, #tpu.memory_space<vmem>>, vector<1x128x32xbf16>
    %204 = vector.shape_cast %203 : vector<1x128x32xbf16> to vector<128x32xbf16>
    %205 = arith.truncf %202 : vector<16x128xf32> to vector<16x128xbf16>
    %cst_57 = arith.constant dense<0.000000e+00> : vector<16x32xf32>
    %206 = tpu.matmul %205, %204, %cst_57 {dimension_numbers = #tpu.dot_dimension_numbers<[1], [0], [0], [1], [0, 0, 1, 1], [], []>} : vector<16x128xbf16>, vector<128x32xbf16>, vector<16x32xf32> -> vector<16x32xf32>
    %207 = arith.addf %165, %206 : vector<16x32xf32>
    %208 = vector.broadcast %38 : vector<1x32xf32> to vector<16x32xf32>
    %209 = arith.addf %207, %208 : vector<16x32xf32>
    %c1 = arith.constant 1 : index
    %c0_58 = arith.constant 0 : index
    %c0_59 = arith.constant 0 : index
    %210 = vector.load %arg9[%c1, %c0_58, %c0_59] : memref<3x8x32xf32, #tpu.memory_space<vmem>>, vector<1x8x32xf32>
    %211 = vector.shape_cast %210 : vector<1x8x32xf32> to vector<8x32xf32>
    %212 = vector.extract_strided_slice %211 {offsets = [0, 0], sizes = [1, 32], strides = [1, 1]} : vector<8x32xf32> to vector<1x32xf32>
    %213 = vector.extract_strided_slice %211 {offsets = [1, 0], sizes = [1, 32], strides = [1, 1]} : vector<8x32xf32> to vector<1x32xf32>
    %214 = vector.extract_strided_slice %211 {offsets = [2, 0], sizes = [1, 32], strides = [1, 1]} : vector<8x32xf32> to vector<1x32xf32>
    %215 = vector.extract_strided_slice %211 {offsets = [3, 0], sizes = [1, 32], strides = [1, 1]} : vector<8x32xf32> to vector<1x32xf32>
    %216 = vector.extract_strided_slice %211 {offsets = [4, 0], sizes = [1, 32], strides = [1, 1]} : vector<8x32xf32> to vector<1x32xf32>
    %217 = vector.extract_strided_slice %211 {offsets = [5, 0], sizes = [1, 32], strides = [1, 1]} : vector<8x32xf32> to vector<1x32xf32>
    %cst_60 = arith.constant dense<0.000000e+00> : vector<16xf32>
    %218 = vector.multi_reduction <add>, %209, %cst_60 [1] : vector<16x32xf32> to vector<16xf32>
    %219 = vector.shape_cast %218 : vector<16xf32> to vector<16x1xf32>
    %cst_61 = arith.constant 3.200000e+01 : f32
    %220 = vector.broadcast %cst_61 : f32 to vector<16x1xf32>
    %221 = arith.divf %219, %220 : vector<16x1xf32>
    %222 = vector.broadcast %221 : vector<16x1xf32> to vector<16x32xf32>
    %223 = arith.subf %209, %222 : vector<16x32xf32>
    %224 = arith.mulf %223, %223 : vector<16x32xf32>
    %cst_62 = arith.constant dense<0.000000e+00> : vector<16xf32>
    %225 = vector.multi_reduction <add>, %224, %cst_62 [1] : vector<16x32xf32> to vector<16xf32>
    %226 = vector.shape_cast %225 : vector<16xf32> to vector<16x1xf32>
    %cst_63 = arith.constant 3.200000e+01 : f32
    %227 = vector.broadcast %cst_63 : f32 to vector<16x1xf32>
    %228 = arith.divf %226, %227 : vector<16x1xf32>
    %cst_64 = arith.constant 9.99999997E-7 : f32
    %229 = vector.broadcast %cst_64 : f32 to vector<16x1xf32>
    %230 = arith.addf %228, %229 : vector<16x1xf32>
    %231 = math.rsqrt %230 : vector<16x1xf32>
    %232 = vector.broadcast %231 : vector<16x1xf32> to vector<16x32xf32>
    %233 = arith.mulf %223, %232 : vector<16x32xf32>
    %234 = vector.broadcast %212 : vector<1x32xf32> to vector<16x32xf32>
    %235 = arith.mulf %233, %234 : vector<16x32xf32>
    %236 = vector.broadcast %213 : vector<1x32xf32> to vector<16x32xf32>
    %237 = arith.addf %235, %236 : vector<16x32xf32>
    %238 = arith.truncf %237 : vector<16x32xf32> to vector<16x32xbf16>
    %c1_65 = arith.constant 1 : index
    %c0_66 = arith.constant 0 : index
    %c0_67 = arith.constant 0 : index
    %239 = vector.load %arg3[%c1_65, %c0_66, %c0_67] : memref<2x32x128xbf16, #tpu.memory_space<vmem>>, vector<1x32x128xbf16>
    %240 = vector.shape_cast %239 : vector<1x32x128xbf16> to vector<32x128xbf16>
    %cst_68 = arith.constant dense<0.000000e+00> : vector<16x128xf32>
    %241 = tpu.matmul %238, %240, %cst_68 {dimension_numbers = #tpu.dot_dimension_numbers<[1], [0], [0], [1], [0, 0, 1, 1], [], []>} : vector<16x32xbf16>, vector<32x128xbf16>, vector<16x128xf32> -> vector<16x128xf32>
    %c1_69 = arith.constant 1 : index
    %c0_70 = arith.constant 0 : index
    %c0_71 = arith.constant 0 : index
    %242 = vector.load %arg4[%c1_69, %c0_70, %c0_71] : memref<2x1x128xf32, #tpu.memory_space<vmem>>, vector<1x1x128xf32>
    %243 = vector.shape_cast %242 : vector<1x1x128xf32> to vector<1x128xf32>
    %244 = vector.broadcast %243 : vector<1x128xf32> to vector<16x128xf32>
    %245 = arith.addf %241, %244 : vector<16x128xf32>
    %246 = vector.extract_strided_slice %245 {offsets = [0, 0], sizes = [16, 32], strides = [1, 1]} : vector<16x128xf32> to vector<16x32xf32>
    %247 = vector.extract_strided_slice %245 {offsets = [0, 32], sizes = [16, 32], strides = [1, 1]} : vector<16x128xf32> to vector<16x32xf32>
    %248 = vector.extract_strided_slice %245 {offsets = [0, 64], sizes = [16, 32], strides = [1, 1]} : vector<16x128xf32> to vector<16x32xf32>
    %cst_72 = arith.constant 0.000000e+00 : f32
    %249 = vector.broadcast %cst_72 : f32 to vector<16x32xf32>
    %250 = vector.broadcast %9 : vector<1x32xf32> to vector<16x32xf32>
    %251 = arith.mulf %246, %250 : vector<16x32xf32>
    %252 = arith.truncf %251 : vector<16x32xf32> to vector<16x32xbf16>
    %253 = arith.truncf %247 : vector<16x32xf32> to vector<16x32xbf16>
    %cst_73 = arith.constant dense<0.000000e+00> : vector<16x16xf32>
    %254 = tpu.matmul %252, %253, %cst_73 {dimension_numbers = #tpu.dot_dimension_numbers<[1], [1], [0], [0], [0, 0, 1, 0], [], []>} : vector<16x32xbf16>, vector<16x32xbf16>, vector<16x16xf32> -> vector<16x16xf32>
    %255 = arith.addf %254, %0 : vector<16x16xf32>
    %cst_74 = arith.constant dense<0xFF800000> : vector<16xf32>
    %256 = vector.multi_reduction <maximumf>, %255, %cst_74 [1] : vector<16x16xf32> to vector<16xf32>
    %257 = vector.shape_cast %256 : vector<16xf32> to vector<16x1xf32>
    %258 = vector.broadcast %257 : vector<16x1xf32> to vector<16x16xf32>
    %259 = arith.subf %255, %258 : vector<16x16xf32>
    %260 = math.exp %259 : vector<16x16xf32>
    %cst_75 = arith.constant dense<0.000000e+00> : vector<16xf32>
    %261 = vector.multi_reduction <add>, %260, %cst_75 [1] : vector<16x16xf32> to vector<16xf32>
    %262 = vector.shape_cast %261 : vector<16xf32> to vector<16x1xf32>
    %263 = tpu.reciprocal %262 {approx = true} : vector<16x1xf32> -> vector<16x1xf32>
    %264 = vector.broadcast %263 : vector<16x1xf32> to vector<16x16xf32>
    %265 = arith.mulf %260, %264 : vector<16x16xf32>
    %266 = vector.broadcast %9 : vector<1x32xf32> to vector<16x32xf32>
    %267 = arith.mulf %248, %266 : vector<16x32xf32>
    %268 = arith.truncf %265 : vector<16x16xf32> to vector<16x16xbf16>
    %269 = arith.truncf %267 : vector<16x32xf32> to vector<16x32xbf16>
    %cst_76 = arith.constant dense<0.000000e+00> : vector<16x32xf32>
    %270 = tpu.matmul %268, %269, %cst_76 {dimension_numbers = #tpu.dot_dimension_numbers<[1], [0], [0], [1], [0, 0, 1, 1], [], []>} : vector<16x16xbf16>, vector<16x32xbf16>, vector<16x32xf32> -> vector<16x32xf32>
    %271 = arith.addf %249, %270 : vector<16x32xf32>
    %272 = vector.broadcast %16 : vector<1x32xf32> to vector<16x32xf32>
    %273 = arith.mulf %246, %272 : vector<16x32xf32>
    %274 = arith.truncf %273 : vector<16x32xf32> to vector<16x32xbf16>
    %275 = arith.truncf %247 : vector<16x32xf32> to vector<16x32xbf16>
    %cst_77 = arith.constant dense<0.000000e+00> : vector<16x16xf32>
    %276 = tpu.matmul %274, %275, %cst_77 {dimension_numbers = #tpu.dot_dimension_numbers<[1], [1], [0], [0], [0, 0, 1, 0], [], []>} : vector<16x32xbf16>, vector<16x32xbf16>, vector<16x16xf32> -> vector<16x16xf32>
    %277 = arith.addf %276, %0 : vector<16x16xf32>
    %cst_78 = arith.constant dense<0xFF800000> : vector<16xf32>
    %278 = vector.multi_reduction <maximumf>, %277, %cst_78 [1] : vector<16x16xf32> to vector<16xf32>
    %279 = vector.shape_cast %278 : vector<16xf32> to vector<16x1xf32>
    %280 = vector.broadcast %279 : vector<16x1xf32> to vector<16x16xf32>
    %281 = arith.subf %277, %280 : vector<16x16xf32>
    %282 = math.exp %281 : vector<16x16xf32>
    %cst_79 = arith.constant dense<0.000000e+00> : vector<16xf32>
    %283 = vector.multi_reduction <add>, %282, %cst_79 [1] : vector<16x16xf32> to vector<16xf32>
    %284 = vector.shape_cast %283 : vector<16xf32> to vector<16x1xf32>
    %285 = tpu.reciprocal %284 {approx = true} : vector<16x1xf32> -> vector<16x1xf32>
    %286 = vector.broadcast %285 : vector<16x1xf32> to vector<16x16xf32>
    %287 = arith.mulf %282, %286 : vector<16x16xf32>
    %288 = vector.broadcast %16 : vector<1x32xf32> to vector<16x32xf32>
    %289 = arith.mulf %248, %288 : vector<16x32xf32>
    %290 = arith.truncf %287 : vector<16x16xf32> to vector<16x16xbf16>
    %291 = arith.truncf %289 : vector<16x32xf32> to vector<16x32xbf16>
    %cst_80 = arith.constant dense<0.000000e+00> : vector<16x32xf32>
    %292 = tpu.matmul %290, %291, %cst_80 {dimension_numbers = #tpu.dot_dimension_numbers<[1], [0], [0], [1], [0, 0, 1, 1], [], []>} : vector<16x16xbf16>, vector<16x32xbf16>, vector<16x32xf32> -> vector<16x32xf32>
    %293 = arith.addf %271, %292 : vector<16x32xf32>
    %294 = vector.broadcast %23 : vector<1x32xf32> to vector<16x32xf32>
    %295 = arith.mulf %246, %294 : vector<16x32xf32>
    %296 = arith.truncf %295 : vector<16x32xf32> to vector<16x32xbf16>
    %297 = arith.truncf %247 : vector<16x32xf32> to vector<16x32xbf16>
    %cst_81 = arith.constant dense<0.000000e+00> : vector<16x16xf32>
    %298 = tpu.matmul %296, %297, %cst_81 {dimension_numbers = #tpu.dot_dimension_numbers<[1], [1], [0], [0], [0, 0, 1, 0], [], []>} : vector<16x32xbf16>, vector<16x32xbf16>, vector<16x16xf32> -> vector<16x16xf32>
    %299 = arith.addf %298, %0 : vector<16x16xf32>
    %cst_82 = arith.constant dense<0xFF800000> : vector<16xf32>
    %300 = vector.multi_reduction <maximumf>, %299, %cst_82 [1] : vector<16x16xf32> to vector<16xf32>
    %301 = vector.shape_cast %300 : vector<16xf32> to vector<16x1xf32>
    %302 = vector.broadcast %301 : vector<16x1xf32> to vector<16x16xf32>
    %303 = arith.subf %299, %302 : vector<16x16xf32>
    %304 = math.exp %303 : vector<16x16xf32>
    %cst_83 = arith.constant dense<0.000000e+00> : vector<16xf32>
    %305 = vector.multi_reduction <add>, %304, %cst_83 [1] : vector<16x16xf32> to vector<16xf32>
    %306 = vector.shape_cast %305 : vector<16xf32> to vector<16x1xf32>
    %307 = tpu.reciprocal %306 {approx = true} : vector<16x1xf32> -> vector<16x1xf32>
    %308 = vector.broadcast %307 : vector<16x1xf32> to vector<16x16xf32>
    %309 = arith.mulf %304, %308 : vector<16x16xf32>
    %310 = vector.broadcast %23 : vector<1x32xf32> to vector<16x32xf32>
    %311 = arith.mulf %248, %310 : vector<16x32xf32>
    %312 = arith.truncf %309 : vector<16x16xf32> to vector<16x16xbf16>
    %313 = arith.truncf %311 : vector<16x32xf32> to vector<16x32xbf16>
    %cst_84 = arith.constant dense<0.000000e+00> : vector<16x32xf32>
    %314 = tpu.matmul %312, %313, %cst_84 {dimension_numbers = #tpu.dot_dimension_numbers<[1], [0], [0], [1], [0, 0, 1, 1], [], []>} : vector<16x16xbf16>, vector<16x32xbf16>, vector<16x32xf32> -> vector<16x32xf32>
    %315 = arith.addf %293, %314 : vector<16x32xf32>
    %316 = vector.broadcast %30 : vector<1x32xf32> to vector<16x32xf32>
    %317 = arith.mulf %246, %316 : vector<16x32xf32>
    %318 = arith.truncf %317 : vector<16x32xf32> to vector<16x32xbf16>
    %319 = arith.truncf %247 : vector<16x32xf32> to vector<16x32xbf16>
    %cst_85 = arith.constant dense<0.000000e+00> : vector<16x16xf32>
    %320 = tpu.matmul %318, %319, %cst_85 {dimension_numbers = #tpu.dot_dimension_numbers<[1], [1], [0], [0], [0, 0, 1, 0], [], []>} : vector<16x32xbf16>, vector<16x32xbf16>, vector<16x16xf32> -> vector<16x16xf32>
    %321 = arith.addf %320, %0 : vector<16x16xf32>
    %cst_86 = arith.constant dense<0xFF800000> : vector<16xf32>
    %322 = vector.multi_reduction <maximumf>, %321, %cst_86 [1] : vector<16x16xf32> to vector<16xf32>
    %323 = vector.shape_cast %322 : vector<16xf32> to vector<16x1xf32>
    %324 = vector.broadcast %323 : vector<16x1xf32> to vector<16x16xf32>
    %325 = arith.subf %321, %324 : vector<16x16xf32>
    %326 = math.exp %325 : vector<16x16xf32>
    %cst_87 = arith.constant dense<0.000000e+00> : vector<16xf32>
    %327 = vector.multi_reduction <add>, %326, %cst_87 [1] : vector<16x16xf32> to vector<16xf32>
    %328 = vector.shape_cast %327 : vector<16xf32> to vector<16x1xf32>
    %329 = tpu.reciprocal %328 {approx = true} : vector<16x1xf32> -> vector<16x1xf32>
    %330 = vector.broadcast %329 : vector<16x1xf32> to vector<16x16xf32>
    %331 = arith.mulf %326, %330 : vector<16x16xf32>
    %332 = vector.broadcast %30 : vector<1x32xf32> to vector<16x32xf32>
    %333 = arith.mulf %248, %332 : vector<16x32xf32>
    %334 = arith.truncf %331 : vector<16x16xf32> to vector<16x16xbf16>
    %335 = arith.truncf %333 : vector<16x32xf32> to vector<16x32xbf16>
    %cst_88 = arith.constant dense<0.000000e+00> : vector<16x32xf32>
    %336 = tpu.matmul %334, %335, %cst_88 {dimension_numbers = #tpu.dot_dimension_numbers<[1], [0], [0], [1], [0, 0, 1, 1], [], []>} : vector<16x16xbf16>, vector<16x32xbf16>, vector<16x32xf32> -> vector<16x32xf32>
    %337 = arith.addf %315, %336 : vector<16x32xf32>
    %c1_89 = arith.constant 1 : index
    %c0_90 = arith.constant 0 : index
    %c0_91 = arith.constant 0 : index
    %338 = vector.load %arg5[%c1_89, %c0_90, %c0_91] : memref<2x32x32xbf16, #tpu.memory_space<vmem>>, vector<1x32x32xbf16>
    %339 = vector.shape_cast %338 : vector<1x32x32xbf16> to vector<32x32xbf16>
    %340 = arith.truncf %337 : vector<16x32xf32> to vector<16x32xbf16>
    %cst_92 = arith.constant dense<0.000000e+00> : vector<16x32xf32>
    %341 = tpu.matmul %340, %339, %cst_92 {dimension_numbers = #tpu.dot_dimension_numbers<[1], [0], [0], [1], [0, 0, 1, 1], [], []>} : vector<16x32xbf16>, vector<32x32xbf16>, vector<16x32xf32> -> vector<16x32xf32>
    %342 = arith.addf %209, %341 : vector<16x32xf32>
    %343 = vector.broadcast %216 : vector<1x32xf32> to vector<16x32xf32>
    %344 = arith.addf %342, %343 : vector<16x32xf32>
    %cst_93 = arith.constant dense<0.000000e+00> : vector<16xf32>
    %345 = vector.multi_reduction <add>, %344, %cst_93 [1] : vector<16x32xf32> to vector<16xf32>
    %346 = vector.shape_cast %345 : vector<16xf32> to vector<16x1xf32>
    %cst_94 = arith.constant 3.200000e+01 : f32
    %347 = vector.broadcast %cst_94 : f32 to vector<16x1xf32>
    %348 = arith.divf %346, %347 : vector<16x1xf32>
    %349 = vector.broadcast %348 : vector<16x1xf32> to vector<16x32xf32>
    %350 = arith.subf %344, %349 : vector<16x32xf32>
    %351 = arith.mulf %350, %350 : vector<16x32xf32>
    %cst_95 = arith.constant dense<0.000000e+00> : vector<16xf32>
    %352 = vector.multi_reduction <add>, %351, %cst_95 [1] : vector<16x32xf32> to vector<16xf32>
    %353 = vector.shape_cast %352 : vector<16xf32> to vector<16x1xf32>
    %cst_96 = arith.constant 3.200000e+01 : f32
    %354 = vector.broadcast %cst_96 : f32 to vector<16x1xf32>
    %355 = arith.divf %353, %354 : vector<16x1xf32>
    %cst_97 = arith.constant 9.99999997E-7 : f32
    %356 = vector.broadcast %cst_97 : f32 to vector<16x1xf32>
    %357 = arith.addf %355, %356 : vector<16x1xf32>
    %358 = math.rsqrt %357 : vector<16x1xf32>
    %359 = vector.broadcast %358 : vector<16x1xf32> to vector<16x32xf32>
    %360 = arith.mulf %350, %359 : vector<16x32xf32>
    %361 = vector.broadcast %214 : vector<1x32xf32> to vector<16x32xf32>
    %362 = arith.mulf %360, %361 : vector<16x32xf32>
    %363 = vector.broadcast %215 : vector<1x32xf32> to vector<16x32xf32>
    %364 = arith.addf %362, %363 : vector<16x32xf32>
    %365 = arith.truncf %364 : vector<16x32xf32> to vector<16x32xbf16>
    %c1_98 = arith.constant 1 : index
    %c0_99 = arith.constant 0 : index
    %c0_100 = arith.constant 0 : index
    %366 = vector.load %arg6[%c1_98, %c0_99, %c0_100] : memref<2x32x256xbf16, #tpu.memory_space<vmem>>, vector<1x32x256xbf16>
    %367 = vector.shape_cast %366 : vector<1x32x256xbf16> to vector<32x256xbf16>
    %cst_101 = arith.constant dense<0.000000e+00> : vector<16x256xf32>
    %368 = tpu.matmul %365, %367, %cst_101 {dimension_numbers = #tpu.dot_dimension_numbers<[1], [0], [0], [1], [0, 0, 1, 1], [], []>} : vector<16x32xbf16>, vector<32x256xbf16>, vector<16x256xf32> -> vector<16x256xf32>
    %c1_102 = arith.constant 1 : index
    %c0_103 = arith.constant 0 : index
    %c0_104 = arith.constant 0 : index
    %369 = vector.load %arg7[%c1_102, %c0_103, %c0_104] : memref<2x1x256xf32, #tpu.memory_space<vmem>>, vector<1x1x256xf32>
    %370 = vector.shape_cast %369 : vector<1x1x256xf32> to vector<1x256xf32>
    %371 = vector.broadcast %370 : vector<1x256xf32> to vector<16x256xf32>
    %372 = arith.addf %368, %371 : vector<16x256xf32>
    %373 = vector.extract_strided_slice %372 {offsets = [0, 0], sizes = [16, 128], strides = [1, 1]} : vector<16x256xf32> to vector<16x128xf32>
    %374 = vector.extract_strided_slice %372 {offsets = [0, 128], sizes = [16, 128], strides = [1, 1]} : vector<16x256xf32> to vector<16x128xf32>
    %375 = arith.negf %373 : vector<16x128xf32>
    %376 = math.exp %375 : vector<16x128xf32>
    %cst_105 = arith.constant 1.000000e+00 : f32
    %377 = vector.broadcast %cst_105 : f32 to vector<16x128xf32>
    %378 = arith.addf %377, %376 : vector<16x128xf32>
    %379 = arith.divf %377, %378 : vector<16x128xf32>
    %380 = arith.mulf %373, %379 : vector<16x128xf32>
    %381 = arith.mulf %380, %374 : vector<16x128xf32>
    %c1_106 = arith.constant 1 : index
    %c0_107 = arith.constant 0 : index
    %c0_108 = arith.constant 0 : index
    %382 = vector.load %arg8[%c1_106, %c0_107, %c0_108] : memref<2x128x32xbf16, #tpu.memory_space<vmem>>, vector<1x128x32xbf16>
    %383 = vector.shape_cast %382 : vector<1x128x32xbf16> to vector<128x32xbf16>
    %384 = arith.truncf %381 : vector<16x128xf32> to vector<16x128xbf16>
    %cst_109 = arith.constant dense<0.000000e+00> : vector<16x32xf32>
    %385 = tpu.matmul %384, %383, %cst_109 {dimension_numbers = #tpu.dot_dimension_numbers<[1], [0], [0], [1], [0, 0, 1, 1], [], []>} : vector<16x128xbf16>, vector<128x32xbf16>, vector<16x32xf32> -> vector<16x32xf32>
    %386 = arith.addf %344, %385 : vector<16x32xf32>
    %387 = vector.broadcast %217 : vector<1x32xf32> to vector<16x32xf32>
    %388 = arith.addf %386, %387 : vector<16x32xf32>
    %c2 = arith.constant 2 : index
    %c0_110 = arith.constant 0 : index
    %c0_111 = arith.constant 0 : index
    %389 = vector.load %arg9[%c2, %c0_110, %c0_111] : memref<3x8x32xf32, #tpu.memory_space<vmem>>, vector<1x8x32xf32>
    %390 = vector.shape_cast %389 : vector<1x8x32xf32> to vector<8x32xf32>
    %391 = vector.extract_strided_slice %390 {offsets = [0, 0], sizes = [1, 32], strides = [1, 1]} : vector<8x32xf32> to vector<1x32xf32>
    %392 = vector.extract_strided_slice %390 {offsets = [1, 0], sizes = [1, 32], strides = [1, 1]} : vector<8x32xf32> to vector<1x32xf32>
    %cst_112 = arith.constant dense<0.000000e+00> : vector<16xf32>
    %393 = vector.multi_reduction <add>, %388, %cst_112 [1] : vector<16x32xf32> to vector<16xf32>
    %394 = vector.shape_cast %393 : vector<16xf32> to vector<16x1xf32>
    %cst_113 = arith.constant 3.200000e+01 : f32
    %395 = vector.broadcast %cst_113 : f32 to vector<16x1xf32>
    %396 = arith.divf %394, %395 : vector<16x1xf32>
    %397 = vector.broadcast %396 : vector<16x1xf32> to vector<16x32xf32>
    %398 = arith.subf %388, %397 : vector<16x32xf32>
    %399 = arith.mulf %398, %398 : vector<16x32xf32>
    %cst_114 = arith.constant dense<0.000000e+00> : vector<16xf32>
    %400 = vector.multi_reduction <add>, %399, %cst_114 [1] : vector<16x32xf32> to vector<16xf32>
    %401 = vector.shape_cast %400 : vector<16xf32> to vector<16x1xf32>
    %cst_115 = arith.constant 3.200000e+01 : f32
    %402 = vector.broadcast %cst_115 : f32 to vector<16x1xf32>
    %403 = arith.divf %401, %402 : vector<16x1xf32>
    %cst_116 = arith.constant 9.99999997E-7 : f32
    %404 = vector.broadcast %cst_116 : f32 to vector<16x1xf32>
    %405 = arith.addf %403, %404 : vector<16x1xf32>
    %406 = math.rsqrt %405 : vector<16x1xf32>
    %407 = vector.broadcast %406 : vector<16x1xf32> to vector<16x32xf32>
    %408 = arith.mulf %398, %407 : vector<16x32xf32>
    %409 = vector.broadcast %391 : vector<1x32xf32> to vector<16x32xf32>
    %410 = arith.mulf %408, %409 : vector<16x32xf32>
    %411 = vector.broadcast %392 : vector<1x32xf32> to vector<16x32xf32>
    %412 = arith.addf %410, %411 : vector<16x32xf32>
    %413 = arith.truncf %412 : vector<16x32xf32> to vector<16x32xbf16>
    %c0_117 = arith.constant 0 : index
    %c0_118 = arith.constant 0 : index
    %414 = vector.load %arg10[%c0_117, %c0_118] : memref<32x128xbf16, #tpu.memory_space<vmem>>, vector<32x128xbf16>
    %cst_119 = arith.constant dense<0.000000e+00> : vector<16x128xf32>
    %415 = tpu.matmul %413, %414, %cst_119 {dimension_numbers = #tpu.dot_dimension_numbers<[1], [0], [0], [1], [0, 0, 1, 1], [], []>} : vector<16x32xbf16>, vector<32x128xbf16>, vector<16x128xf32> -> vector<16x128xf32>
    %c0_120 = arith.constant 0 : index
    %c0_121 = arith.constant 0 : index
    %416 = vector.load %arg11[%c0_120, %c0_121] : memref<16x128xf32, #tpu.memory_space<vmem>>, vector<16x128xf32>
    tpu.vector_store %arg11[%c0_120, %c0_121], %415 {strides = array<i32>} : memref<16x128xf32, #tpu.memory_space<vmem>>, vector<16x128xf32>,
    return
  }
  func.func @transform_0(%arg0: i32) -> (i32, i32) {
    %c0_i32 = arith.constant 0 : i32
    %c0_i32_0 = arith.constant 0 : i32
    return %arg0, %c0_i32 : i32, i32
  }
  func.func @transform_1(%arg0: i32) -> (i32, i32) {
    %c0_i32 = arith.constant 0 : i32
    %c0_i32_0 = arith.constant 0 : i32
    %c0_i32_1 = arith.constant 0 : i32
    return %c0_i32, %c0_i32_0 : i32, i32
  }
  func.func @transform_2(%arg0: i32) -> (i32, i32, i32) {
    %c0_i32 = arith.constant 0 : i32
    %c0_i32_0 = arith.constant 0 : i32
    %c0_i32_1 = arith.constant 0 : i32
    %c0_i32_2 = arith.constant 0 : i32
    return %c0_i32, %c0_i32_0, %c0_i32_1 : i32, i32, i32
  }
  func.func @transform_3(%arg0: i32) -> (i32, i32, i32) {
    %c0_i32 = arith.constant 0 : i32
    %c0_i32_0 = arith.constant 0 : i32
    %c0_i32_1 = arith.constant 0 : i32
    %c0_i32_2 = arith.constant 0 : i32
    return %c0_i32, %c0_i32_0, %c0_i32_1 : i32, i32, i32
  }
  func.func @transform_4(%arg0: i32) -> (i32, i32, i32) {
    %c0_i32 = arith.constant 0 : i32
    %c0_i32_0 = arith.constant 0 : i32
    %c0_i32_1 = arith.constant 0 : i32
    %c0_i32_2 = arith.constant 0 : i32
    return %c0_i32, %c0_i32_0, %c0_i32_1 : i32, i32, i32
  }
  func.func @transform_5(%arg0: i32) -> (i32, i32, i32) {
    %c0_i32 = arith.constant 0 : i32
    %c0_i32_0 = arith.constant 0 : i32
    %c0_i32_1 = arith.constant 0 : i32
    %c0_i32_2 = arith.constant 0 : i32
    return %c0_i32, %c0_i32_0, %c0_i32_1 : i32, i32, i32
  }
  func.func @transform_6(%arg0: i32) -> (i32, i32, i32) {
    %c0_i32 = arith.constant 0 : i32
    %c0_i32_0 = arith.constant 0 : i32
    %c0_i32_1 = arith.constant 0 : i32
    %c0_i32_2 = arith.constant 0 : i32
    return %c0_i32, %c0_i32_0, %c0_i32_1 : i32, i32, i32
  }
  func.func @transform_7(%arg0: i32) -> (i32, i32, i32) {
    %c0_i32 = arith.constant 0 : i32
    %c0_i32_0 = arith.constant 0 : i32
    %c0_i32_1 = arith.constant 0 : i32
    %c0_i32_2 = arith.constant 0 : i32
    return %c0_i32, %c0_i32_0, %c0_i32_1 : i32, i32, i32
  }
  func.func @transform_8(%arg0: i32) -> (i32, i32, i32) {
    %c0_i32 = arith.constant 0 : i32
    %c0_i32_0 = arith.constant 0 : i32
    %c0_i32_1 = arith.constant 0 : i32
    %c0_i32_2 = arith.constant 0 : i32
    return %c0_i32, %c0_i32_0, %c0_i32_1 : i32, i32, i32
  }
  func.func @transform_9(%arg0: i32) -> (i32, i32) {
    %c0_i32 = arith.constant 0 : i32
    %c0_i32_0 = arith.constant 0 : i32
    %c0_i32_1 = arith.constant 0 : i32
    return %c0_i32, %c0_i32_0 : i32, i32
  }
  func.func @transform_10(%arg0: i32) -> (i32, i32) {
    %c0_i32 = arith.constant 0 : i32
    %c0_i32_0 = arith.constant 0 : i32
    return %arg0, %c0_i32 : i32, i32
  }
}

</mosaic_0001>

<bundles_post_ra>
// kernel: gpt_forward.1
= control target key start
LH: loop header
LB: loop body
LE: loop exit
PB: predicated region body
PF: predicated region fallthrough
CT: control target
= control target key end

     0   :  { %s2991_s13 = smov 0   ;;  %s3596_s0 = inlined_call_operand.vmem [shape: f32[32,32], index: 0, kind: input, shape index: {}]   ;;  %s3597_s1 = inlined_call_operand.vmem [shape: f32[16,16], index: 1, kind: input, shape index: {}]   ;;  %s3598_s2 = inlined_call_operand.vmem [shape: bf16[2,32,128], index: 2, kind: input, shape index: {}]   ;;  %s3599_s3 = inlined_call_operand.vmem [shape: f32[2,1,128], index: 3, kind: input, shape index: {}]   ;;  %s3600_s4 = inlined_call_operand.vmem [shape: bf16[2,32,32], index: 4, kind: input, shape index: {}]   ;;  %s3601_s5 = inlined_call_operand.vmem [shape: bf16[2,32,256], index: 5, kind: input, shape index: {}]   ;;  %s3602_s6 = inlined_call_operand.vmem [shape: f32[2,1,256], index: 6, kind: input, shape index: {}]   ;;  %s3603_s7 = inlined_call_operand.vmem [shape: bf16[2,128,32], index: 7, kind: input, shape index: {}]   ;;  %s3604_s8 = inlined_call_operand.vmem [shape: f32[3,8,32], index: 8, kind: input, shape index: {}]   ;;  %s3605_s9 = inlined_call_operand.vmem [shape: bf16[32,128], index: 9, kind: input, shape index: {}]   ;;  %s3606_s10 = inlined_call_operand.vmem [shape: f32[32,128], index: 10, kind: output, shape index: {}]  }
   0x1 LB: > { %s2419_s14 = sadd.s32 4294967295, %s2929_s13   ;;  %p2423_p0 = scmp.ge.s32.totalorder %s2929_s13, 1  ;;  %s2929_s13 = sphi %s2991_s13, %s20_s13  }
   0x2   : > { %p313_p1 = scmp.lt.s32.totalorder %s2929_s13, 3 }
   0x4   : > { %p314_p2 = pnand %p2423_p0, %p313_p1 }
   0x5   : > { %s2424_s15 = sshll.u32 (!%p314_p2), %s2419_s14, 1  ;;  %s2933_s28 = smov (!%p314_p2), 96  }
   0x6   : > { %317 = sbr.rel (%p314_p2) target bundleno = 6221 (0x184d), region = 60  ;;  %p352_p3 = scmp.lt.s32.totalorder (!%p314_p2), %s2424_s15, 3 }
   0x7   : > { %s2934_s14 = smov (!%p314_p2), 64  }
   0xb   : > { %s3608_s15 = smov (!%p352_p3, %s2424_s15), 3  ;;  %vm391_vm0 = vcmask 261120   ;;  %v2783_v14 = vld [vmem:[%s3598_s2 + $0x8] sm:$0xff]   ;;  %v2931_v15 = vmov 0.0   ;;  %vm2932_vm1 = vmmov 0   ;;  %v2784_v16 = vld [vmem:[%s3598_s2] sm:$0xff]   ;;  %v368_v23 = vlaneseq }
   0xc   : > { %s2425_s16 = sshll.u32 %s3608_s15, 3  ;;  %2594 = vmatprep.subr.bf16.mxu1 %v2931_v15  ;;  %2598 = vmatprep.mubr.msk.bf16.mxu1 %vm2932_vm1, %v2931_v15  ;;  %v3041_v26 = vld [vmem:[%s3604_s8] sm:$0xff]  ;;  %vm553_vm6 = vcmask 130048  }
   0xd   : > { %s355_s19 = scalar_lea.vmem %s3596_s0, %s2425_s16  ;;  %2595 = vmatpush3.bf16.msra.mxu1 %v2783_v14  ;;  %2608 = vmatprep.subr.bf16.mxu0 %v2931_v15  ;;  %v3033_v24 = vshrl.u32 %v368_v23, 7  ;;  %v2432_v40 = vld [vmem:[%s3599_s3] ss:$0 sm:$0xff]  ;;  %v3063_v47 = vand.u32 127, %v368_v23  ;;  %s361_s12 = scalar_lea.vmem %s3606_s10, %s2425_s16 }
   0xe   : > { %v3007_v0 = vld [vmem:[%s355_s19] sm:$0xff]  ;;  %v3009_v1 = vld [vmem:[%s355_s19 + $0x8] sm:$0xff]  ;;  %2596 = vmatprep.subr.bf16.mxu1 %v2931_v15  ;;  %2610 = vmatprep.mubr.msk.bf16.mxu0 %vm2932_vm1, %v2931_v15 }
   0xf   : > { %v392_v2 = vsel %vm391_vm0, %v3007_v0, 0.0  ;;  %v395_v3 = vsel %vm391_vm0, %v3009_v1, 0.0  ;;  %v3036_v25 = vsub.s32 0, %v3033_v24  ;;  %v3046_v30 = vsub.s32 1, %v3033_v24  ;;  %v3098_v58 = vld [vmem:[%s3597_s1] sm:$0xff] }
  0x10   : > { %393 = vadd.xlane.f32.xlu0 %v392_v2  ;;  %vm375_vm2 = vcmp.ge.s32.totalorder %v3063_v47, 8  ;;  %vm376_vm3 = vcmp.lt.s32.totalorder %v3063_v47, 16  ;;  %vm371_vm4 = vcmp.lt.s32.totalorder %v3063_v47, 8  ;;  %v3104_v2 = vld [vmem:[%s3597_s1 + $0x8] sm:$0xff]  ;;  %vm380_vm7 = vcmp.ge.s32.totalorder %v3063_v47, 16 }
  0x11   : > { %2597 = vmatpush3.bf16.msra.mxu1 %v2784_v16  ;;  %v422_v29 = vrot.slane %v3041_v26, %v3036_v25  ;;  %v428_v34 = vrot.slane %v3041_v26, %v3046_v30  ;;  %vm377_vm5 = vmand %vm375_vm2, %vm376_vm3  ;;  %v3074_v50 = vsel %vm371_vm4, 1.0, %v2931_v15  ;;  %vm381_vm8 = vcmp.lt.s32.totalorder %v3063_v47, 24 }
  0x12   : > { %2602 = vmatprep.subr.bf16.mxu1 %v2931_v15  ;;  %v3077_v51 = vsel %vm377_vm5, 1.0, %v2931_v15  ;;  %vm382_vm9 = vmand %vm380_vm7, %vm381_vm8  ;;  %vm385_vm10 = vcmp.ge.s32.totalorder %v3063_v47, 24  ;;  %vm386_vm11 = vcmp.lt.s32.totalorder %v3063_v47, 32 }
  0x13   : > { %vm387_vm12 = vmand %vm385_vm10, %vm386_vm11 }
  0x14   : > { %396 = vadd.xlane.f32.xlu0 %v395_v3 }
  0x99   : > { %v394_v4 = vpop.xlane.xlu0 %393 }
  0x9a   : > { %v399_v5 = vmul.f32 0.03125, %v394_v4 }
  0x9c   : > { %v401_v6 = vsub.f32 %v3007_v0, %v399_v5 }
  0x9d   : > { %v397_v7 = vpop.xlane.xlu0 %396 }
  0x9e   : > { %v400_v8 = vmul.f32 0.03125, %v397_v7  ;;  %v403_v9 = vmul.f32 %v401_v6, %v401_v6 }
  0xa0   : > { %v402_v10 = vsub.f32 %v3009_v1, %v400_v8  ;;  %v405_v11 = vsel %vm391_vm0, %v403_v9, 0.0 }
  0xa1   : > { %406 = vadd.xlane.f32.xlu1 %v405_v11 }
  0xa2   : > { %v404_v12 = vmul.f32 %v402_v10, %v402_v10 }
  0xa4   : > { %v408_v13 = vsel %vm391_vm0, %v404_v12, 0.0 }
  0xa5   : > { %409 = vadd.xlane.f32.xlu1 %v408_v13 }
 0x12a   : > { %v407_v17 = vpop.xlane.xlu1 %406 }
 0x12b   : > { %v411_v18 = vmul.f32 0.03125, %v407_v17 }
 0x12d   : > { %v413_v19 = vadd.f32 1e-06, %v411_v18 }
 0x12e   : > { %v410_v20 = vpop.xlane.xlu1 %409 }
 0x12f   : > { %2821 = vrsqrt.f32 %v413_v19  ;;  %v412_v21 = vmul.f32 0.03125, %v410_v20 }
 0x131   : > { %v414_v22 = vadd.f32 1e-06, %v412_v21 }
 0x133   : > { %2823 = vrsqrt.f32 %v414_v22 }
 0x13c   : > { %v2822_v27 = vpop.eup %2821 }
 0x13d   : > { %v417_v28 = vmul.f32 %v2822_v27, %v401_v6 }
 0x13f   : > { %v423_v33 = vmul.f32 %v422_v29, %v417_v28 }
 0x140   : > { %v2824_v31 = vpop.eup %2823 }
 0x141   : > { %v418_v32 = vmul.f32 %v2824_v31, %v402_v10  ;;  %v429_v36 = vadd.f32 %v428_v34, %v423_v33 }
 0x143   : > { %v424_v35 = vmul.f32 %v422_v29, %v418_v32 }
 0x145   : > { %v430_v37 = vadd.f32 %v428_v34, %v424_v35 }
 0x147   : > { %v431_v38 = vpack.c.bf16 %v430_v37, %v429_v36 }
 0x149   : > { %2599 = vmatmul.mubr.msk.bf16.vlgmr.msra.gmra.mxu1 %vm391_vm0, %v431_v38 }
 0x14a   : > { %2604 = vmatprep.mubr.msk.bf16.mxu1 %vm2932_vm1, %v2931_v15 }
 0x209   : > { %v492_v39 = vpop.f32.mrf.mxu1 }
 0x20a   : > { %v3056_v43 = vadd.f32 %v2432_v40, %v492_v39 }
 0x20b   : > { %v2600_v41 = vpop.f32.mrf.mxu1 }
 0x20c   : > { %v499_v54 = vmul.f32 %v3074_v50, %v3056_v43  ;;  %v584_v55 = vmul.f32 %v3077_v51, %v3056_v43  ;;  %v3135_v41 = vsel %vm382_vm9, 1.0, %v2931_v15 }
 0x20d   : > { %v495_v42 = vpop.f32.mrf.mxu1 }
 0x20e   : > { %v3058_v44 = vadd.f32 %v2432_v40, %v495_v42 }
 0x20f   : > { %v2601_v45 = vpop.f32.mrf.mxu1 }
 0x210   : > { %v502_v46 = vpack.c.bf16 %v3058_v44, %v3056_v43  ;;  %v500_v52 = vmul.f32 %v3074_v50, %v3058_v44  ;;  %v585_v53 = vmul.f32 %v3077_v51, %v3058_v44  ;;  %v758_v42 = vmul.f32 %v3135_v41, %v3058_v44 }
 0x211   : > { %v757_v45 = vmul.f32 %v3135_v41, %v3056_v43 }
 0x212   : > { %504 = vrot.lane.b32.xlu0 %v502_v46, %s2933_s28  ;;  %v501_v56 = vpack.c.bf16 %v500_v52, %v499_v54  ;;  %v586_v57 = vpack.c.bf16 %v585_v53, %v584_v55 }
 0x213   : > { %v759_v46 = vpack.c.bf16 %v758_v42, %v757_v45 }
 0x284   : > { %v505_v48 = vpop.permute.xlu0 %504 }
 0x285   : > { %v3069_v49 = vsel %vm391_vm0, %v505_v48, 0  ;;  %v3149_v48 = vsel %vm387_vm12, 1.0, %v2931_v15 }
 0x286   : > { %2603 = vmatpush3.bf16.xpose.msra.mxu1 %v3069_v49  ;;  %2609 = vmatpush3.bf16.xpose.msra.mxu0 %v3069_v49  ;;  %v885_v52 = vmul.f32 %v3149_v48, %v3058_v44  ;;  %v884_v47 = vmul.f32 %v3149_v48, %v3056_v43 }
 0x287   : > { %2614 = vmatprep.subr.bf16.mxu1 %v2931_v15  ;;  %2620 = vmatprep.subr.bf16.mxu0 %v2931_v15 }
 0x288   : > { %v886_v53 = vpack.c.bf16 %v885_v52, %v884_v47 }
 0x28d   : > { %2605 = vmatmul.mubr.msk.bf16.vlgmr.msra.gmra.mxu1 %vm391_vm0, %v501_v56  ;;  %2611 = vmatmul.mubr.msk.bf16.vlgmr.msra.gmra.mxu0 %vm391_vm0, %v586_v57 }
 0x28e   : > { %2616 = vmatprep.mubr.msk.bf16.mxu1 %vm2932_vm1, %v2931_v15  ;;  %2622 = vmatprep.mubr.msk.bf16.mxu0 %vm2932_vm1, %v2931_v15 }
 0x34d   : > { %v546_v59 = vpop.f32.mrf.mxu1  ;;  %v624_v60 = vpop.f32.mrf.mxu0 }
 0x34e   : > { %v625_v61 = vadd.f32 %v624_v60, %v3098_v58  ;;  %v547_v20 = vadd.f32 %v546_v59, %v3098_v58 }
 0x34f   : > { %v2606_v62 = vpop.f32.mrf.mxu1  ;;  %v2612_v63 = vpop.f32.mrf.mxu0 }
 0x350   : > { %v631_v3 = vsel %vm553_vm6, %v625_v61, -inf  ;;  %v554_v23 = vsel %vm553_vm6, %v547_v20, -inf }
 0x351   : > { %632 = vmax.xlane.f32.xlu1 %v631_v3  ;;  %v549_v4 = vpop.f32.mrf.mxu1  ;;  %v627_v5 = vpop.f32.mrf.mxu0 }
 0x352   : > { %v628_v6 = vadd.f32 %v627_v5, %v3104_v2  ;;  %v3115_v22 = vadd.f32 %v549_v4, %v3104_v2 }
 0x353   : > { %v2607_v7 = vpop.f32.mrf.mxu1  ;;  %v2613_v8 = vpop.f32.mrf.mxu0 }
 0x354   : > { %v634_v9 = vsel %vm553_vm6, %v628_v6, -inf  ;;  %v557_v27 = vsel %vm553_vm6, %v3115_v22, -inf }
 0x355   : > { %635 = vmax.xlane.f32.xlu1 %v634_v9 }
 0x366   : > { %654 = vrot.lane.b32.xlu1 %v3077_v51, %s2934_s14 }
 0x3da   : > { %v633_v10 = vpop.xlane.xlu1 %632 }
 0x3db   : > { %v637_v11 = vsub.f32 %v625_v61, %v633_v10 }
 0x3dd   : > { %v639_v12 = vmul.f32 1.442695, %v637_v11 }
 0x3de   : > { %v636_v13 = vpop.xlane.xlu1 %635 }
 0x3df   : > { %2825 = vpow2.f32 %v639_v12  ;;  %v638_v14 = vsub.f32 %v628_v6, %v636_v13 }
 0x3e1   : > { %v641_v16 = vmul.f32 1.442695, %v638_v14 }
 0x3e2   : > { %v3120_v28 = vpop.permute.xlu1 %654 }
 0x3e3   : > { %2827 = vpow2.f32 %v641_v16  ;;  %v657_v29 = vmul.f32 %v3120_v28, %v3056_v43  ;;  %v658_v31 = vmul.f32 %v3120_v28, %v3058_v44 }
 0x3e5   : > { %v660_v32 = vpack.c.bf16 %v658_v31, %v657_v29 }
 0x3ec   : > { %v2826_v17 = vpop.eup %2825 }
 0x3ed   : > { %v643_v18 = vsel %vm553_vm6, %v2826_v17, 0.0 }
 0x3ee   : > { %644 = vadd.xlane.f32.xlu0 %v643_v18 }
 0x3f0   : > { %v2828_v19 = vpop.eup %2827 }
 0x3f1   : > { %v646_v21 = vsel %vm553_vm6, %v2828_v19, 0.0 }
 0x3f2   : > { %647 = vadd.xlane.f32.xlu1 %v646_v21 }
 0x3f6   : > { %555 = vmax.xlane.f32.xlu1 %v554_v23 }
 0x3fa   : > { %558 = vmax.xlane.f32.xlu1 %v557_v27 }
 0x404   : > { %662 = vrot.lane.b32.xlu0 %v660_v32, %s2934_s14 }
 0x477   : > { %v645_v33 = vpop.xlane.xlu0 %644 }
 0x478   : > { %2829 = vrcp.f32 %v645_v33 }
 0x47b   : > { %v663_v34 = vpop.permute.xlu0 %662  ;;  %v648_v35 = vpop.xlane.xlu1 %647 }
 0x47c   : > { %2831 = vrcp.f32 %v648_v35  ;;  %2615 = vmatpush3.bf16.msra.mxu1 %v663_v34 }
 0x47d   : > { %2626 = vmatprep.subr.bf16.mxu1 %v2931_v15 }
 0x485   : > { %v2830_v36 = vpop.eup %2829 }
 0x486   : > { %v651_v38 = vmul.f32 %v2830_v36, %v2826_v17 }
 0x489   : > { %v2832_v37 = vpop.eup %2831 }
 0x48a   : > { %v652_v39 = vmul.f32 %v2832_v37, %v2828_v19 }
 0x48c   : > { %v659_v40 = vpack.c.bf16 %v652_v39, %v651_v38 }
 0x48e   : > { %2617 = vmatmul.mubr.msk.bf16.vlgmr.msra.gmra.mxu1 %vm553_vm6, %v659_v40 }
 0x48f   : > { %2627 = vmatpush3.bf16.xpose.msra.mxu1 %v3069_v49  ;;  %2628 = vmatprep.mubr.msk.bf16.mxu1 %vm2932_vm1, %v2931_v15 }
 0x490   : > { %2638 = vmatprep.subr.bf16.mxu1 %v2931_v15 }
 0x496   : > { %2629 = vmatmul.mubr.msk.bf16.vlgmr.msra.gmra.mxu1 %vm391_vm0, %v759_v46 }
 0x497   : > { %2639 = vmatpush3.bf16.xpose.msra.mxu1 %v3069_v49  ;;  %2640 = vmatprep.mubr.msk.bf16.mxu1 %vm2932_vm1, %v2931_v15  ;;  %v556_v49 = vpop.xlane.xlu1 %555 }
 0x498   : > { %2650 = vmatprep.subr.bf16.mxu1 %v2931_v15  ;;  %v560_v54 = vsub.f32 %v547_v20, %v556_v49 }
 0x49a   : > { %v562_v57 = vmul.f32 1.442695, %v560_v54 }
 0x49b   : > { %v559_v19 = vpop.xlane.xlu1 %558 }
 0x49c   : > { %2833 = vpow2.f32 %v562_v57  ;;  %v561_v20 = vsub.f32 %v3115_v22, %v559_v19 }
 0x49e   : > { %2641 = vmatmul.mubr.msk.bf16.vlgmr.msra.gmra.mxu1 %vm391_vm0, %v886_v53  ;;  %v564_v21 = vmul.f32 1.442695, %v561_v20 }
 0x49f   : > { %2654 = vmatprep.mubr.msk.bf16.mxu1 %vm2932_vm1, %v2931_v15 }
 0x4a0   : > { %2835 = vpow2.f32 %v564_v21 }
 0x4a9   : > { %v3169_v12 = vpop.eup %2833 }
 0x4aa   : > { %v566_v17 = vsel %vm553_vm6, %v3169_v12, 0.0 }
 0x4ad   : > { %v2836_v23 = vpop.eup %2835 }
 0x4ae   : > { %v569_v27 = vsel %vm553_vm6, %v2836_v23, 0.0 }
 0x54e   : > { %v3159_v55 = vpop.f32.mrf.mxu1 }
 0x550   : > { %v2618_v56 = vpop.f32.mrf.mxu1 }
 0x552   : > { %v3161_v59 = vpop.f32.mrf.mxu1 }
 0x554   : > { %v2619_v60 = vpop.f32.mrf.mxu1 }
 0x556   : > { %v797_v61 = vpop.f32.mrf.mxu1 }
 0x557   : > { %v798_v62 = vadd.f32 %v797_v61, %v3098_v58 }
 0x558   : > { %v2630_v63 = vpop.f32.mrf.mxu1 }
 0x559   : > { %v804_v3 = vsel %vm553_vm6, %v798_v62, -inf }
 0x55a   : > { %805 = vmax.xlane.f32.xlu1 %v804_v3  ;;  %v800_v4 = vpop.f32.mrf.mxu1 }
 0x55b   : > { %v801_v5 = vadd.f32 %v800_v4, %v3104_v2 }
 0x55c   : > { %v2631_v6 = vpop.f32.mrf.mxu1 }
 0x55d   : > { %v807_v7 = vsel %vm553_vm6, %v801_v5, -inf }
 0x55e   : > { %808 = vmax.xlane.f32.xlu1 %v807_v7  ;;  %v924_v8 = vpop.f32.mrf.mxu1 }
 0x55f   : > { %v925_v9 = vadd.f32 %v924_v8, %v3098_v58 }
 0x560   : > { %v2642_v10 = vpop.f32.mrf.mxu1 }
 0x561   : > { %v931_v11 = vsel %vm553_vm6, %v925_v9, -inf }
 0x562   : > { %932 = vmax.xlane.f32.xlu0 %v931_v11  ;;  %v927_v13 = vpop.f32.mrf.mxu1 }
 0x563   : > { %v928_v14 = vadd.f32 %v927_v13, %v3104_v2 }
 0x564   : > { %v2643_v16 = vpop.f32.mrf.mxu1 }
 0x565   : > { %v934_v18 = vsel %vm553_vm6, %v928_v14, -inf }
 0x566   : > { %567 = vadd.xlane.f32.xlu0 %v566_v17  ;;  %935 = vmax.xlane.f32.xlu1 %v934_v18 }
 0x577   : > { %577 = vrot.lane.b32.xlu1 %v3074_v50, %s2934_s14 }
 0x57b   : > { %827 = vrot.lane.b32.xlu1 %v3135_v41, %s2934_s14 }
 0x57f   : > { %954 = vrot.lane.b32.xlu1 %v3149_v48, %s2934_s14 }
 0x5a3   : > { %570 = vadd.xlane.f32.xlu1 %v569_v27 }
 0x5e3   : > { %v806_v29 = vpop.xlane.xlu1 %805 }
 0x5e4   : > { %v810_v40 = vsub.f32 %v798_v62, %v806_v29 }
 0x5e6   : > { %v812_v42 = vmul.f32 1.442695, %v810_v40  ;;  %v2786_v40 = vld [vmem:[%s3600_s4] sm:$0xff]  }
 0x5e7   : > { %v809_v31 = vpop.xlane.xlu1 %808 }
 0x5e8   : > { %v811_v45 = vsub.f32 %v801_v5, %v809_v31  ;;  %2837 = vpow2.f32 %v812_v42 }
 0x5ea   : > { %v814_v52 = vmul.f32 1.442695, %v811_v45 }
 0x5eb   : > { %v933_v46 = vpop.xlane.xlu0 %932 }
 0x5ec   : > { %v937_v47 = vsub.f32 %v925_v9, %v933_v46  ;;  %2839 = vpow2.f32 %v814_v52 }
 0x5ee   : > { %v939_v53 = vmul.f32 1.442695, %v937_v47 }
 0x5ef   : > { %v936_v32 = vpop.xlane.xlu1 %935  ;;  %v568_v10 = vpop.xlane.xlu0 %567 }
 0x5f0   : > { %v938_v49 = vsub.f32 %v928_v14, %v936_v32  ;;  %2841 = vpow2.f32 %v939_v53 }
 0x5f2   : > { %v941_v54 = vmul.f32 1.442695, %v938_v49 }
 0x5f3   : > { %v3183_v33 = vpop.permute.xlu1 %577 }
 0x5f4   : > { %v580_v34 = vmul.f32 %v3183_v33, %v3056_v43  ;;  %v581_v35 = vmul.f32 %v3183_v33, %v3058_v44  ;;  %2843 = vpow2.f32 %v941_v54 }
 0x5f5   : > { %v2838_v56 = vpop.eup %2837 }
 0x5f6   : > { %v583_v36 = vpack.c.bf16 %v581_v35, %v580_v34  ;;  %v816_v57 = vsel %vm553_vm6, %v2838_v56, 0.0 }
 0x5f7   : > { %v3189_v37 = vpop.permute.xlu1 %827 }
 0x5f8   : > { %v830_v22 = vmul.f32 %v3189_v37, %v3056_v43  ;;  %v831_v38 = vmul.f32 %v3189_v37, %v3058_v44  ;;  %710 = vrot.lane.b32.xlu0 %v583_v36, %s2934_s14 }
 0x5f9   : > { %v2840_v60 = vpop.eup %2839 }
 0x5fa   : > { %v833_v39 = vpack.c.bf16 %v831_v38, %v830_v22  ;;  %v819_v61 = vsel %vm553_vm6, %v2840_v60, 0.0 }
 0x5fb   : > { %v3201_v5 = vpop.permute.xlu1 %954 }
 0x5fc   : > { %835 = vrot.lane.b32.xlu1 %v833_v39, %s2934_s14  ;;  %v957_v6 = vmul.f32 %v3201_v5, %v3056_v43  ;;  %v958_v7 = vmul.f32 %v3201_v5, %v3058_v44  ;;  %v2785_v39 = vld [vmem:[%s3600_s4 + $0x8] sm:$0xff]  }
 0x5fd   : > { %v2842_v62 = vpop.eup %2841  ;;  %2651 = vmatpush3.bf16.msra.mxu1 %v2785_v39 }
 0x5fe   : > { %v943_v63 = vsel %vm553_vm6, %v2842_v62, 0.0  ;;  %v960_v8 = vpack.c.bf16 %v958_v7, %v957_v6  ;;  %2652 = vmatprep.subr.bf16.mxu1 %v2931_v15 }
 0x601   : > { %v2844_v3 = vpop.eup %2843  ;;  %2653 = vmatpush3.bf16.msra.mxu1 %v2786_v40 }
 0x602   : > { %v946_v4 = vsel %vm553_vm6, %v2844_v3, 0.0  ;;  %2658 = vmatprep.subr.bf16.mxu1 %v2931_v15 }
 0x617   : > { %817 = vadd.xlane.f32.xlu0 %v816_v57 }
 0x61b   : > { %820 = vadd.xlane.f32.xlu0 %v819_v61 }
 0x61f   : > { %944 = vadd.xlane.f32.xlu0 %v943_v63 }
 0x623   : > { %947 = vadd.xlane.f32.xlu0 %v946_v4 }
 0x62c   : > { %v571_v9 = vpop.xlane.xlu1 %570 }
 0x62d   : > { %2845 = vrcp.f32 %v571_v9  ;;  %v1076_v9 = vsub.s32 4, %v3033_v24 }
 0x62e   : > { %2847 = vrcp.f32 %v568_v10 }
 0x639   : > { %962 = vrot.lane.b32.xlu0 %v960_v8, %s2934_s14 }
 0x63a   : > { %v2846_v11 = vpop.eup %2845 }
 0x63b   : > { %v2848_v13 = vpop.eup %2847  ;;  %v575_v14 = vmul.f32 %v2846_v11, %v2836_v23 }
 0x63c   : > { %v574_v17 = vmul.f32 %v2848_v13, %v3169_v12 }
 0x63e   : > { %v582_v18 = vpack.c.bf16 %v575_v14, %v574_v17 }
 0x66a   : > { %v711_v16 = vpop.permute.xlu0 %710 }
 0x66b   : > { %2621 = vmatpush3.bf16.msra.mxu0 %v711_v16 }
 0x66c   : > { %2632 = vmatprep.subr.bf16.mxu0 %v2931_v15 }
 0x66e   : > { %2623 = vmatmul.mubr.msk.bf16.vlgmr.msra.gmra.mxu0 %vm553_vm6, %v582_v18  ;;  %v836_v43 = vpop.permute.xlu1 %835 }
 0x66f   : > { %2633 = vmatpush3.bf16.msra.mxu0 %v836_v43  ;;  %2634 = vmatprep.mubr.msk.bf16.mxu0 %vm2932_vm1, %v2931_v15 }
 0x670   : > { %2644 = vmatprep.subr.bf16.mxu0 %v2931_v15 }
 0x6a0   : > { %v818_v44 = vpop.xlane.xlu0 %817 }
 0x6a1   : > { %2849 = vrcp.f32 %v818_v44 }
 0x6a4   : > { %v821_v19 = vpop.xlane.xlu0 %820 }
 0x6a5   : > { %2851 = vrcp.f32 %v821_v19 }
 0x6a8   : > { %v945_v20 = vpop.xlane.xlu0 %944 }
 0x6a9   : > { %2853 = vrcp.f32 %v945_v20 }
 0x6ac   : > { %v948_v12 = vpop.xlane.xlu0 %947 }
 0x6ad   : > { %2855 = vrcp.f32 %v948_v12 }
 0x6ae   : > { %v2850_v21 = vpop.eup %2849 }
 0x6af   : > { %v824_v27 = vmul.f32 %v2850_v21, %v2838_v56 }
 0x6b0   : > { %v963_v32 = vpop.permute.xlu0 %962 }
 0x6b2   : > { %v2852_v23 = vpop.eup %2851 }
 0x6b3   : > { %v825_v29 = vmul.f32 %v2852_v23, %v2840_v60 }
 0x6b5   : > { %v832_v31 = vpack.c.bf16 %v825_v29, %v824_v27 }
 0x6b6   : > { %v2854_v34 = vpop.eup %2853 }
 0x6b7   : > { %2635 = vmatmul.mubr.msk.bf16.vlgmr.msra.gmra.mxu0 %vm553_vm6, %v832_v31  ;;  %v951_v36 = vmul.f32 %v2854_v34, %v2842_v62  ;;  %v2787_v34 = vld [vmem:[%s3601_s5 + $0x10] ss:$8 sps:$4 sm:$0xff]  }
 0x6b8   : > { %2645 = vmatpush3.bf16.msra.mxu0 %v963_v32  ;;  %2646 = vmatprep.mubr.msk.bf16.mxu0 %vm2932_vm1, %v2931_v15  ;;  %v2789_v32 = vld [vmem:[%s3601_s5 + $0x14] ss:$8 sps:$4 sm:$0xff]  }
 0x6b9   : > { %1170 = vmatprep.subr.bf16.mxu0 %v2789_v32 }
 0x6ba   : > { %v2856_v35 = vpop.eup %2855 }
 0x6bb   : > { %v952_v22 = vmul.f32 %v2856_v35, %v2844_v3  ;;  %v2792_v35 = vld [vmem:[%s3601_s5 + $0x4] ss:$8 sps:$4 sm:$0xff]  }
 0x6bd   : > { %v959_v38 = vpack.c.bf16 %v952_v22, %v951_v36  ;;  %v2790_v36 = vld [vmem:[%s3601_s5] ss:$8 sps:$4 sm:$0xff]   ;;  %v2935_v22 = vmov 0  }
 0x6bf   : > { %2647 = vmatmul.mubr.msk.bf16.vlgmr.msra.gmra.mxu0 %vm553_vm6, %v959_v38 }
 0x6c0   : > { %1171 = vmatpush1.bf16.msra.mxu0 %v2787_v34  ;;  %1190 = vmatprep.mubr.bf16.mxu0 %v2935_v22 }
 0x6c1   : > { %1172 = vmatprep.subr.bf16.mxu0 %v2792_v35 }
 0x6c4   : > { %1173 = vmatpush1.bf16.msra.mxu0 %v2790_v36 }
 0x6c5   : > { %2678 = vmatprep.subr.bf16.mxu0 %v2931_v15 }
 0x72e   : > { %v750_v42 = vpop.f32.mrf.mxu0 }
 0x72f   : > { %v751_v57 = vadd.f32 %v750_v42, %v3159_v55  ;;  %v1077_v55 = vrot.slane %v3041_v26, %v1076_v9 }
 0x730   : > { %v2624_v45 = vpop.f32.mrf.mxu0 }
 0x732   : > { %v753_v46 = vpop.f32.mrf.mxu0 }
 0x733   : > { %v754_v60 = vadd.f32 %v753_v46, %v3161_v59 }
 0x734   : > { %v2625_v52 = vpop.f32.mrf.mxu0 }
 0x735   : > { %v1108_v52 = vsub.s32 2, %v3033_v24 }
 0x777   : > { %v875_v47 = vpop.f32.mrf.mxu0 }
 0x778   : > { %v882_v62 = vadd.f32 %v875_v47, %v751_v57 }
 0x779   : > { %v2636_v53 = vpop.f32.mrf.mxu0 }
 0x77b   : > { %v878_v49 = vpop.f32.mrf.mxu0 }
 0x77c   : > { %v883_v63 = vadd.f32 %v878_v49, %v754_v60  ;;  %v1109_v49 = vrot.slane %v3041_v26, %v1108_v52 }
 0x77d   : > { %v2637_v54 = vpop.f32.mrf.mxu0 }
 0x77e   : > { %v1114_v54 = vsub.s32 3, %v3033_v24 }
 0x77f   : > { %v1002_v56 = vpop.f32.mrf.mxu0 }
 0x780   : > { %v1009_v4 = vadd.f32 %v1002_v56, %v882_v62 }
 0x781   : > { %v2648_v61 = vpop.f32.mrf.mxu0 }
 0x782   : > { %v1115_v61 = vrot.slane %v3041_v26, %v1114_v54 }
 0x783   : > { %v1005_v3 = vpop.f32.mrf.mxu0 }
 0x784   : > { %v1010_v6 = vadd.f32 %v1005_v3, %v883_v63 }
 0x785   : > { %v2649_v7 = vpop.f32.mrf.mxu0 }
 0x786   : > { %v1015_v8 = vpack.c.bf16 %v1010_v6, %v1009_v4  ;;  %v2793_v6 = vld [vmem:[%s3603_s7 + $0x38] sm:$0xff]   ;;  %v2794_v7 = vld [vmem:[%s3603_s7 + $0x30] sm:$0xff]  }
 0x788   : > { %2655 = vmatmul.mubr.msk.bf16.vlgmr.msra.gmra.mxu1 %vm391_vm0, %v1015_v8  ;;  %v2795_v8 = vld [vmem:[%s3603_s7 + $0x28] sm:$0xff]  }
 0x789   : > { %2674 = vmatprep.mubr.msk.bf16.mxu1 %vm2932_vm1, %v2931_v15  ;;  %2659 = vmatpush3.bf16.msra.mxu1 %v2793_v6 }
 0x78a   : > { %2660 = vmatprep.subr.bf16.mxu1 %v2931_v15 }
 0x78d   : > { %2661 = vmatpush3.bf16.msra.mxu1 %v2794_v7 }
 0x78e   : > { %2662 = vmatprep.subr.bf16.mxu1 %v2931_v15 }
 0x791   : > { %2663 = vmatpush3.bf16.msra.mxu1 %v2795_v8 }
 0x792   : > { %2664 = vmatprep.subr.bf16.mxu1 %v2931_v15 }
 0x848   : > { %v1065_v59 = vpop.f32.mrf.mxu1 }
 0x849   : > { %v1072_v10 = vadd.f32 %v1065_v59, %v3007_v0  ;;  %v2797_v59 = vld [vmem:[%s3603_s7 + $0x18] sm:$0xff]  }
 0x84a   : > { %v2656_v11 = vpop.f32.mrf.mxu1 }
 0x84b   : > { %v3236_v13 = vadd.f32 %v1077_v55, %v1072_v10  ;;  %v2798_v10 = vld [vmem:[%s3603_s7 + $0x10] sm:$0xff]   ;;  %v2799_v11 = vld [vmem:[%s3603_s7 + $0x8] sm:$0xff]  }
 0x84c   : > { %v1068_v14 = vpop.f32.mrf.mxu1 }
 0x84d   : > { %v1073_v16 = vadd.f32 %v1068_v14, %v3009_v1  ;;  %v1080_v17 = vsel %vm391_vm0, %v3236_v13, 0.0  ;;  %v2800_v14 = vld [vmem:[%s3603_s7] sm:$0xff]  }
 0x84e   : > { %1081 = vadd.xlane.f32.xlu0 %v1080_v17  ;;  %v2657_v18 = vpop.f32.mrf.mxu1 }
 0x84f   : > { %v3241_v43 = vadd.f32 %v1077_v55, %v1073_v16  ;;  %v2796_v55 = vld [vmem:[%s3603_s7 + $0x20] sm:$0xff]  }
 0x850   : > { %2665 = vmatpush3.bf16.msra.mxu1 %v2796_v55  ;;  %v1123_v16 = vld [vmem:[%s3602_s6] sm:$0x3] }
 0x851   : > { %v1083_v44 = vsel %vm391_vm0, %v3241_v43, 0.0  ;;  %2666 = vmatprep.subr.bf16.mxu1 %v2931_v15  ;;  %v1128_v17 = vrot.slane %v1123_v16, %v3036_v25  ;;  %v1132_v32 = vrot.slane %v1123_v16, %v3046_v30  ;;  %v2801_v16 = vld [vmem:[%s3598_s2 + $0x18] sm:$0xff]  }
 0x852   : > { %1084 = vadd.xlane.f32.xlu1 %v1083_v44 }
 0x854   : > { %2667 = vmatpush3.bf16.msra.mxu1 %v2797_v59 }
 0x855   : > { %2668 = vmatprep.subr.bf16.mxu1 %v2931_v15 }
 0x858   : > { %2669 = vmatpush3.bf16.msra.mxu1 %v2798_v10 }
 0x859   : > { %2670 = vmatprep.subr.bf16.mxu1 %v2931_v15 }
 0x85c   : > { %2671 = vmatpush3.bf16.msra.mxu1 %v2799_v11 }
 0x85d   : > { %2672 = vmatprep.subr.bf16.mxu1 %v2931_v15 }
 0x860   : > { %2673 = vmatpush3.bf16.msra.mxu1 %v2800_v14 }
 0x861   : > { %2704 = vmatprep.subr.bf16.mxu1 %v2931_v15 }
 0x8d7   : > { %v1082_v19 = vpop.xlane.xlu0 %1081 }
 0x8d8   : > { %v1086_v20 = vmul.f32 0.03125, %v1082_v19 }
 0x8da   : > { %v1088_v0 = vsub.f32 %v3236_v13, %v1086_v20 }
 0x8db   : > { %v1085_v12 = vpop.xlane.xlu1 %1084 }
 0x8dc   : > { %v1087_v21 = vmul.f32 0.03125, %v1085_v12  ;;  %v1090_v23 = vmul.f32 %v1088_v0, %v1088_v0 }
 0x8de   : > { %v1089_v1 = vsub.f32 %v3241_v43, %v1087_v21  ;;  %v1092_v27 = vsel %vm391_vm0, %v1090_v23, 0.0 }
 0x8df   : > { %1093 = vadd.xlane.f32.xlu0 %v1092_v27 }
 0x8e0   : > { %v1091_v29 = vmul.f32 %v1089_v1, %v1089_v1 }
 0x8e2   : > { %v1095_v31 = vsel %vm391_vm0, %v1091_v29, 0.0 }
 0x8e3   : > { %1096 = vadd.xlane.f32.xlu0 %v1095_v31 }
 0x968   : > { %v1094_v38 = vpop.xlane.xlu0 %1093 }
 0x969   : > { %v1098_v39 = vmul.f32 0.03125, %v1094_v38 }
 0x96b   : > { %v1100_v40 = vadd.f32 1e-06, %v1098_v39 }
 0x96c   : > { %v1097_v42 = vpop.xlane.xlu0 %1096 }
 0x96d   : > { %2857 = vrsqrt.f32 %v1100_v40  ;;  %v1099_v45 = vmul.f32 0.03125, %v1097_v42 }
 0x96f   : > { %v1101_v46 = vadd.f32 1e-06, %v1099_v45 }
 0x971   : > { %2859 = vrsqrt.f32 %v1101_v46 }
 0x97a   : > { %v2858_v47 = vpop.eup %2857 }
 0x97b   : > { %v1104_v53 = vmul.f32 %v2858_v47, %v1088_v0  ;;  %v1327_v47 = vsub.s32 5, %v3033_v24 }
 0x97d   : > { %v1110_v60 = vmul.f32 %v1109_v49, %v1104_v53  ;;  %v1328_v53 = vrot.slane %v3041_v26, %v1327_v47 }
 0x97e   : > { %v2860_v56 = vpop.eup %2859 }
 0x97f   : > { %v1105_v57 = vmul.f32 %v2860_v56, %v1089_v1  ;;  %v1116_v63 = vadd.f32 %v1115_v61, %v1110_v60 }
 0x981   : > { %v1111_v62 = vmul.f32 %v1109_v49, %v1105_v57 }
 0x983   : > { %v1117_v3 = vadd.f32 %v1115_v61, %v1111_v62 }
 0x985   : > { %v1118_v4 = vpack.c.bf16 %v1117_v3, %v1116_v63 }
 0x987   : > { %2451 = vmatmul.mubr.msk.bf16.vlgmr.msra.gmra.mxu0 %vm391_vm0, %v1118_v4 }
 0x988   : > { %2682 = vmatprep.mubr.msk.bf16.mxu0 %vm2932_vm1, %v2931_v15  ;;  %2679 = vmatpush3.bf16.msra.mxu0 %v2801_v16 }
 0x989   : > { %2680 = vmatprep.subr.bf16.mxu0 %v2931_v15 }
 0xa47   : > { %v1192_v18 = vpop.f32.mrf.mxu0 }
 0xa48   : > { %v1193_v44 = vadd.f32 %v1192_v18, %v1128_v17 }
 0xa49   : > { %v1194_v19 = vpop.f32.mrf.mxu0 }
 0xa4a   : > { %v2452_v20 = vmul.f32 -1.442695, %v1193_v44  ;;  %v1195_v38 = vadd.f32 %v1194_v19, %v1132_v32 }
 0xa4b   : > { %v1196_v0 = vpop.f32.mrf.mxu0 }
 0xa4c   : > { %2861 = vpow2.f32 %v2452_v20  ;;  %v1197_v12 = vadd.f32 %v1196_v0, %v1128_v17  ;;  %v2802_v17 = vld [vmem:[%s3598_s2 + $0x10] sm:$0xff]  }
 0xa4d   : > { %v1198_v34 = vpop.f32.mrf.mxu0  ;;  %2681 = vmatpush3.bf16.msra.mxu0 %v2802_v17 }
 0xa4e   : > { %v2453_v21 = vmul.f32 -1.442695, %v1197_v12  ;;  %v1199_v40 = vadd.f32 %v1198_v34, %v1132_v32  ;;  %2686 = vmatprep.subr.bf16.mxu0 %v2931_v15 }
 0xa50   : > { %2863 = vpow2.f32 %v2453_v21  ;;  %v3342_v21 = vld [vmem:[%s3604_s8 + $0x8] sm:$0xff] }
 0xa51   : > { %v1368_v34 = vrot.slane %v3342_v21, %v3046_v30 }
 0xa59   : > { %v2862_v23 = vpop.eup %2861 }
 0xa5a   : > { %v1207_v1 = vadd.f32 1.0, %v2862_v23 }
 0xa5c   : > { %2865 = vrcp.f32 %v1207_v1 }
 0xa5d   : > { %v2864_v27 = vpop.eup %2863 }
 0xa5e   : > { %v1208_v29 = vadd.f32 1.0, %v2864_v27  ;;  %v1362_v27 = vrot.slane %v3342_v21, %v3036_v25 }
 0xa60   : > { %2867 = vrcp.f32 %v1208_v29 }
 0xa69   : > { %v2866_v31 = vpop.eup %2865 }
 0xa6a   : > { %v1213_v35 = vmul.f32 %v2866_v31, %v1193_v44 }
 0xa6c   : > { %v1215_v42 = vmul.f32 %v1213_v35, %v1195_v38 }
 0xa6d   : > { %v2868_v36 = vpop.eup %2867 }
 0xa6e   : > { %v1214_v39 = vmul.f32 %v2868_v36, %v1197_v12 }
 0xa70   : > { %v1216_v45 = vmul.f32 %v1214_v39, %v1199_v40  ;;  %v2468_v40 = vld [vmem:[%s3599_s3 + $0x1] ss:$0 sm:$0xff] }
 0xa72   : > { %v1233_v46 = vpack.c.bf16 %v1216_v45, %v1215_v42 }
 0xa74   : > { %2675 = vmatmul.mubr.bf16.vlgmr.msra.gmra.mxu1 %v1233_v46 }
 0xa75   : > { %2706 = vmatprep.mubr.msk.bf16.mxu1 %vm2932_vm1, %v2931_v15 }
 0xb34   : > { %v1316_v49 = vpop.f32.mrf.mxu1 }
 0xb35   : > { %v1323_v56 = vadd.f32 %v1316_v49, %v3236_v13 }
 0xb36   : > { %v2676_v57 = vpop.f32.mrf.mxu1 }
 0xb37   : > { %v3318_v60 = vadd.f32 %v1328_v53, %v1323_v56 }
 0xb38   : > { %v1319_v61 = vpop.f32.mrf.mxu1 }
 0xb39   : > { %v1324_v62 = vadd.f32 %v1319_v61, %v3241_v43  ;;  %v1333_v63 = vsel %vm391_vm0, %v3318_v60, 0.0 }
 0xb3a   : > { %1334 = vadd.xlane.f32.xlu0 %v1333_v63  ;;  %v2677_v3 = vpop.f32.mrf.mxu1 }
 0xb3b   : > { %v3323_v4 = vadd.f32 %v1328_v53, %v1324_v62 }
 0xb3d   : > { %v1336_v6 = vsel %vm391_vm0, %v3323_v4, 0.0 }
 0xb3e   : > { %1337 = vadd.xlane.f32.xlu0 %v1336_v6 }
 0xbc3   : > { %v1335_v26 = vpop.xlane.xlu0 %1334 }
 0xbc4   : > { %v1339_v7 = vmul.f32 0.03125, %v1335_v26 }
 0xbc6   : > { %v1341_v13 = vsub.f32 %v3318_v60, %v1339_v7 }
 0xbc7   : > { %v1338_v8 = vpop.xlane.xlu0 %1337 }
 0xbc8   : > { %v1340_v55 = vmul.f32 0.03125, %v1338_v8  ;;  %v1343_v59 = vmul.f32 %v1341_v13, %v1341_v13 }
 0xbca   : > { %v1342_v43 = vsub.f32 %v3323_v4, %v1340_v55  ;;  %v1345_v10 = vsel %vm391_vm0, %v1343_v59, 0.0 }
 0xbcb   : > { %1346 = vadd.xlane.f32.xlu1 %v1345_v10 }
 0xbcc   : > { %v1344_v11 = vmul.f32 %v1342_v43, %v1342_v43 }
 0xbce   : > { %v1348_v14 = vsel %vm391_vm0, %v1344_v11, 0.0 }
 0xbcf   : > { %1349 = vadd.xlane.f32.xlu0 %v1348_v14 }
 0xc54   : > { %v1347_v18 = vpop.xlane.xlu1 %1346 }
 0xc55   : > { %v1351_v44 = vmul.f32 0.03125, %v1347_v18 }
 0xc57   : > { %v1353_v19 = vadd.f32 1e-06, %v1351_v44 }
 0xc58   : > { %v1350_v20 = vpop.xlane.xlu0 %1349 }
 0xc59   : > { %2869 = vrsqrt.f32 %v1353_v19  ;;  %v1352_v0 = vmul.f32 0.03125, %v1350_v20 }
 0xc5b   : > { %v1354_v12 = vadd.f32 1e-06, %v1352_v0 }
 0xc5d   : > { %2871 = vrsqrt.f32 %v1354_v12 }
 0xc66   : > { %v2870_v23 = vpop.eup %2869 }
 0xc67   : > { %v1357_v1 = vmul.f32 %v2870_v23, %v1341_v13 }
 0xc69   : > { %v1363_v32 = vmul.f32 %v1362_v27, %v1357_v1 }
 0xc6a   : > { %v2872_v29 = vpop.eup %2871 }
 0xc6b   : > { %v1358_v31 = vmul.f32 %v2872_v29, %v1342_v43  ;;  %v1369_v36 = vadd.f32 %v1368_v34, %v1363_v32 }
 0xc6d   : > { %v1364_v35 = vmul.f32 %v1362_v27, %v1358_v31 }
 0xc6f   : > { %v1370_v38 = vadd.f32 %v1368_v34, %v1364_v35 }
 0xc71   : > { %v1371_v39 = vpack.c.bf16 %v1370_v38, %v1369_v36 }
 0xc73   : > { %2683 = vmatmul.mubr.msk.bf16.vlgmr.msra.gmra.mxu0 %vm391_vm0, %v1371_v39 }
 0xc74   : > { %2688 = vmatprep.mubr.msk.bf16.mxu0 %vm2932_vm1, %v2931_v15 }
 0xd33   : > { %v1434_v42 = vpop.f32.mrf.mxu0 }
 0xd34   : > { %v1435_v45 = vadd.f32 %v2468_v40, %v1434_v42 }
 0xd35   : > { %v2684_v46 = vpop.f32.mrf.mxu0 }
 0xd36   : > { %v1590_v56 = vmul.f32 %v1435_v45, %v3120_v28  ;;  %v1441_v57 = vmul.f32 %v3074_v50, %v1435_v45  ;;  %v1521_v61 = vmul.f32 %v3077_v51, %v1435_v45  ;;  %v1759_v63 = vmul.f32 %v1435_v45, %v3189_v37 }
 0xd37   : > { %v1437_v53 = vpop.f32.mrf.mxu0  ;;  %v3359_v3 = vmul.f32 %v3135_v41, %v1435_v45  ;;  %v3362_v6 = vmul.f32 %v3149_v48, %v1435_v45  ;;  %v3365_v26 = vmul.f32 %v1435_v45, %v3201_v5 }
 0xd38   : > { %v1438_v49 = vadd.f32 %v2468_v40, %v1437_v53 }
 0xd39   : > { %v2685_v62 = vpop.f32.mrf.mxu0 }
 0xd3a   : > { %v1444_v7 = vpack.c.bf16 %v1438_v49, %v1435_v45  ;;  %v1591_v13 = vmul.f32 %v1438_v49, %v3120_v28  ;;  %v1442_v8 = vmul.f32 %v3074_v50, %v1438_v49  ;;  %v1522_v55 = vmul.f32 %v3077_v51, %v1438_v49 }
 0xd3b   : > { %v1760_v59 = vmul.f32 %v1438_v49, %v3189_v37  ;;  %v3372_v43 = vmul.f32 %v3135_v41, %v1438_v49  ;;  %v3375_v10 = vmul.f32 %v3149_v48, %v1438_v49  ;;  %v3378_v11 = vmul.f32 %v1438_v49, %v3201_v5 }
 0xd3c   : > { %1446 = vrot.lane.b32.xlu1 %v1444_v7, %s2933_s28  ;;  %v1443_v14 = vpack.c.bf16 %v1442_v8, %v1441_v57  ;;  %v1523_v16 = vpack.c.bf16 %v1522_v55, %v1521_v61  ;;  %v3382_v28 = vmul.f32 %v1435_v45, %v3183_v33  ;;  %v3385_v50 = vmul.f32 %v1438_v49, %v3183_v33 }
 0xd3d   : > { %v1762_v51 = vpack.c.bf16 %v1760_v59, %v1759_v63  ;;  %v1692_v41 = vpack.c.bf16 %v3372_v43, %v3359_v3  ;;  %v1815_v48 = vpack.c.bf16 %v3375_v10, %v3362_v6  ;;  %v1885_v37 = vpack.c.bf16 %v3378_v11, %v3365_v26 }
 0xd3e   : > { %v1593_v5 = vpack.c.bf16 %v1591_v13, %v1590_v56  ;;  %v1520_v17 = vpack.c.bf16 %v3385_v50, %v3382_v28 }
 0xd40   : > { %1595 = vrot.lane.b32.xlu1 %v1593_v5, %s2934_s14 }
 0xdae   : > { %v1447_v18 = vpop.permute.xlu1 %1446 }
 0xdaf   : > { %v1452_v33 = vsel %vm391_vm0, %v1447_v18, 0 }
 0xdb0   : > { %2687 = vmatpush3.bf16.xpose.msra.mxu0 %v1452_v33 }
 0xdb1   : > { %2692 = vmatprep.subr.bf16.mxu0 %v2931_v15 }
 0xdb2   : > { %v1596_v44 = vpop.permute.xlu1 %1595 }
 0xdb7   : > { %2689 = vmatmul.mubr.msk.bf16.vlgmr.msra.gmra.mxu0 %vm391_vm0, %v1443_v14 }
 0xdb8   : > { %2693 = vmatpush3.bf16.xpose.msra.mxu0 %v1452_v33  ;;  %2694 = vmatprep.mubr.msk.bf16.mxu0 %vm2932_vm1, %v2931_v15 }
 0xdb9   : > { %2698 = vmatprep.subr.bf16.mxu0 %v2931_v15 }
 0xdbf   : > { %2695 = vmatmul.mubr.msk.bf16.vlgmr.msra.gmra.mxu0 %vm391_vm0, %v1523_v16 }
 0xdc0   : > { %2699 = vmatpush3.bf16.msra.mxu0 %v1596_v44  ;;  %2700 = vmatprep.mubr.msk.bf16.mxu0 %vm2932_vm1, %v2931_v15 }
 0xdc1   : > { %2710 = vmatprep.subr.bf16.mxu0 %v2931_v15 }
 0xe77   : > { %v1488_v19 = vpop.f32.mrf.mxu0 }
 0xe78   : > { %v1489_v61 = vadd.f32 %v1488_v19, %v3098_v58 }
 0xe79   : > { %v2690_v20 = vpop.f32.mrf.mxu0 }
 0xe7a   : > { %v1495_v63 = vsel %vm553_vm6, %v1489_v61, -inf }
 0xe7b   : > { %v1491_v0 = vpop.f32.mrf.mxu0 }
 0xe7c   : > { %v3407_v12 = vadd.f32 %v1491_v0, %v3104_v2 }
 0xe7d   : > { %v2691_v23 = vpop.f32.mrf.mxu0 }
 0xe7e   : > { %v1498_v1 = vsel %vm553_vm6, %v3407_v12, -inf }
 0xe7f   : > { %1499 = vmax.xlane.f32.xlu1 %v1498_v1  ;;  %v1561_v27 = vpop.f32.mrf.mxu0 }
 0xe80   : > { %v1562_v29 = vadd.f32 %v1561_v27, %v3098_v58 }
 0xe81   : > { %v2696_v31 = vpop.f32.mrf.mxu0 }
 0xe82   : > { %v1568_v32 = vsel %vm553_vm6, %v1562_v29, -inf }
 0xe83   : > { %1569 = vmax.xlane.f32.xlu0 %v1568_v32  ;;  %v1564_v34 = vpop.f32.mrf.mxu0 }
 0xe84   : > { %v1565_v35 = vadd.f32 %v1564_v34, %v3104_v2 }
 0xe85   : > { %v2697_v36 = vpop.f32.mrf.mxu0 }
 0xe86   : > { %v1571_v38 = vsel %vm553_vm6, %v1565_v35, -inf }
 0xe87   : > { %1572 = vmax.xlane.f32.xlu0 %v1571_v38 }
 0xe90   : > { %1764 = vrot.lane.b32.xlu1 %v1762_v51, %s2934_s14 }
 0xf0c   : > { %v1570_v39 = vpop.xlane.xlu0 %1569 }
 0xf0d   : > { %v1574_v40 = vsub.f32 %v1562_v29, %v1570_v39 }
 0xf0f   : > { %v1576_v42 = vmul.f32 1.442695, %v1574_v40 }
 0xf10   : > { %v1573_v45 = vpop.xlane.xlu0 %1572 }
 0xf11   : > { %2873 = vpow2.f32 %v1576_v42  ;;  %v1575_v46 = vsub.f32 %v1565_v35, %v1573_v45 }
 0xf13   : > { %v1578_v53 = vmul.f32 1.442695, %v1575_v46 }
 0xf15   : > { %2875 = vpow2.f32 %v1578_v53 }
 0xf1e   : > { %v2874_v49 = vpop.eup %2873 }
 0xf1f   : > { %v1580_v56 = vsel %vm553_vm6, %v2874_v49, 0.0 }
 0xf20   : > { %1581 = vadd.xlane.f32.xlu0 %v1580_v56 }
 0xf22   : > { %v2876_v57 = vpop.eup %2875 }
 0xf23   : > { %v1583_v62 = vsel %vm553_vm6, %v2876_v57, 0.0 }
 0xf24   : > { %1584 = vadd.xlane.f32.xlu0 %v1583_v62 }
 0xf28   : > { %1496 = vmax.xlane.f32.xlu0 %v1495_v63 }
 0xfa9   : > { %v1582_v7 = vpop.xlane.xlu0 %1581 }
 0xfaa   : > { %2877 = vrcp.f32 %v1582_v7 }
 0xfad   : > { %v1585_v13 = vpop.xlane.xlu0 %1584 }
 0xfae   : > { %2879 = vrcp.f32 %v1585_v13 }
 0xfb1   : > { %v1497_v51 = vpop.xlane.xlu0 %1496 }
 0xfb2   : > { %v1501_v43 = vsub.f32 %v1489_v61, %v1497_v51 }
 0xfb4   : > { %v1503_v19 = vmul.f32 1.442695, %v1501_v43 }
 0xfb6   : > { %2881 = vpow2.f32 %v1503_v19 }
 0xfb7   : > { %v2878_v8 = vpop.eup %2877 }
 0xfb8   : > { %v1588_v59 = vmul.f32 %v2878_v8, %v2874_v49 }
 0xfbb   : > { %v2880_v55 = vpop.eup %2879 }
 0xfbc   : > { %v1589_v14 = vmul.f32 %v2880_v55, %v2876_v57 }
 0xfbe   : > { %v1592_v16 = vpack.c.bf16 %v1589_v14, %v1588_v59 }
 0xfc0   : > { %2701 = vmatmul.mubr.msk.bf16.vlgmr.msra.gmra.mxu0 %vm553_vm6, %v1592_v16 }
 0xfc1   : > { %2711 = vmatpush3.bf16.xpose.msra.mxu0 %v1452_v33  ;;  %2712 = vmatprep.mubr.msk.bf16.mxu0 %vm2932_vm1, %v2931_v15 }
 0xfc2   : > { %2722 = vmatprep.subr.bf16.mxu0 %v2931_v15 }
 0xfc3   : > { %v2882_v40 = vpop.eup %2881 }
 0xfc4   : > { %v1507_v42 = vsel %vm553_vm6, %v2882_v40, 0.0 }
 0xfc8   : > { %2713 = vmatmul.mubr.msk.bf16.vlgmr.msra.gmra.mxu0 %vm391_vm0, %v1692_v41  ;;  %v1500_v41 = vpop.xlane.xlu1 %1499 }
 0xfc9   : > { %2723 = vmatpush3.bf16.xpose.msra.mxu0 %v1452_v33  ;;  %2724 = vmatprep.mubr.msk.bf16.mxu0 %vm2932_vm1, %v2931_v15  ;;  %v1502_v44 = vsub.f32 %v3407_v12, %v1500_v41  ;;  %v2921_v12 = vld [vmem:[%s3597_s1] sm:$0xff] }
 0xfca   : > { %2734 = vmatprep.subr.bf16.mxu0 %v2931_v15 }
 0xfd0   : > { %2725 = vmatmul.mubr.msk.bf16.vlgmr.msra.gmra.mxu0 %vm391_vm0, %v1815_v48  ;;  %v1505_v48 = vmul.f32 1.442695, %v1502_v44 }
 0xfd1   : > { %2738 = vmatprep.mubr.msk.bf16.mxu0 %vm2932_vm1, %v2931_v15 }
 0xfd2   : > { %2883 = vpow2.f32 %v1505_v48 }
 0xfdf   : > { %v2884_v45 = vpop.eup %2883 }
 0xfe0   : > { %v1510_v46 = vsel %vm553_vm6, %v2884_v45, 0.0 }
0x1080   : > { %v3437_v5 = vpop.f32.mrf.mxu0 }
0x1082   : > { %v2702_v3 = vpop.f32.mrf.mxu0 }
0x1084   : > { %v3439_v18 = vpop.f32.mrf.mxu0 }
0x1086   : > { %v2703_v33 = vpop.f32.mrf.mxu0 }
0x1088   : > { %v1730_v20 = vpop.f32.mrf.mxu0 }
0x1089   : > { %v1731_v6 = vadd.f32 %v1730_v20, %v3098_v58 }
0x108a   : > { %v2714_v10 = vpop.f32.mrf.mxu0 }
0x108b   : > { %v1737_v0 = vsel %vm553_vm6, %v1731_v6, -inf }
0x108c   : > { %1738 = vmax.xlane.f32.xlu0 %v1737_v0  ;;  %v1733_v23 = vpop.f32.mrf.mxu0  ;;  %v1765_v0 = vpop.permute.xlu1 %1764 }
0x108d   : > { %v1734_v1 = vadd.f32 %v1733_v23, %v3104_v2  ;;  %v2922_v2 = vld [vmem:[%s3597_s1 + $0x8] sm:$0xff] }
0x108e   : > { %v2715_v27 = vpop.f32.mrf.mxu0 }
0x108f   : > { %v1740_v29 = vsel %vm553_vm6, %v1734_v1, -inf }
0x1090   : > { %1741 = vmax.xlane.f32.xlu0 %v1740_v29  ;;  %v1853_v31 = vpop.f32.mrf.mxu0 }
0x1091   : > { %v1854_v58 = vadd.f32 %v2921_v12, %v1853_v31 }
0x1092   : > { %v2726_v32 = vpop.f32.mrf.mxu0 }
0x1093   : > { %v1860_v34 = vsel %vm553_vm6, %v1854_v58, -inf }
0x1094   : > { %1861 = vmax.xlane.f32.xlu0 %v1860_v34  ;;  %v1856_v35 = vpop.f32.mrf.mxu0 }
0x1095   : > { %v1857_v36 = vadd.f32 %v2922_v2, %v1856_v35 }
0x1096   : > { %v2727_v38 = vpop.f32.mrf.mxu0 }
0x1097   : > { %v1863_v39 = vsel %vm553_vm6, %v1857_v36, -inf  ;;  %v2803_v38 = vld [vmem:[%s3600_s4 + $0x18] sm:$0xff]  }
0x1098   : > { %1864 = vmax.xlane.f32.xlu0 %v1863_v39  ;;  %2735 = vmatpush3.bf16.msra.mxu0 %v2803_v38  ;;  %v2804_v39 = vld [vmem:[%s3600_s4 + $0x10] sm:$0xff]  }
0x1099   : > { %2736 = vmatprep.subr.bf16.mxu0 %v2931_v15 }
0x109c   : > { %1508 = vadd.xlane.f32.xlu0 %v1507_v42  ;;  %2737 = vmatpush3.bf16.msra.mxu0 %v2804_v39 }
0x109d   : > { %2742 = vmatprep.subr.bf16.mxu0 %v2931_v15 }
0x10a0   : > { %1511 = vadd.xlane.f32.xlu0 %v1510_v46 }
0x1115   : > { %v1739_v53 = vpop.xlane.xlu0 %1738 }
0x1116   : > { %v1743_v49 = vsub.f32 %v1731_v6, %v1739_v53 }
0x1118   : > { %v1745_v56 = vmul.f32 1.442695, %v1743_v49 }
0x1119   : > { %v1742_v57 = vpop.xlane.xlu0 %1741 }
0x111a   : > { %2885 = vpow2.f32 %v1745_v56  ;;  %v1744_v61 = vsub.f32 %v1734_v1, %v1742_v57 }
0x111c   : > { %v1747_v62 = vmul.f32 1.442695, %v1744_v61 }
0x111d   : > { %v1862_v63 = vpop.xlane.xlu0 %1861 }
0x111e   : > { %2887 = vpow2.f32 %v1747_v62  ;;  %v1866_v7 = vsub.f32 %v1854_v58, %v1862_v63 }
0x1120   : > { %v1868_v13 = vmul.f32 1.442695, %v1866_v7 }
0x1121   : > { %v1865_v8 = vpop.xlane.xlu0 %1864 }
0x1122   : > { %2889 = vpow2.f32 %v1868_v13  ;;  %v1867_v55 = vsub.f32 %v1857_v36, %v1865_v8 }
0x1124   : > { %v1870_v59 = vmul.f32 1.442695, %v1867_v55 }
0x1125   : > { %v1509_v19 = vpop.xlane.xlu0 %1508 }
0x1126   : > { %2891 = vpow2.f32 %v1870_v59 }
0x1127   : > { %v2886_v14 = vpop.eup %2885 }
0x1128   : > { %v1749_v16 = vsel %vm553_vm6, %v2886_v14, 0.0 }
0x1129   : > { %1750 = vadd.xlane.f32.xlu0 %v1749_v16  ;;  %v1512_v20 = vpop.xlane.xlu0 %1511 }
0x112a   : > { %2893 = vrcp.f32 %v1512_v20 }
0x112b   : > { %v2888_v51 = vpop.eup %2887  ;;  %2895 = vrcp.f32 %v1509_v19 }
0x112c   : > { %v1752_v3 = vsel %vm553_vm6, %v2888_v51, 0.0 }
0x112d   : > { %1753 = vadd.xlane.f32.xlu0 %v1752_v3 }
0x112f   : > { %v2890_v43 = vpop.eup %2889 }
0x1130   : > { %v1872_v41 = vsel %vm553_vm6, %v2890_v43, 0.0 }
0x1131   : > { %1873 = vadd.xlane.f32.xlu0 %v1872_v41 }
0x1133   : > { %v2892_v33 = vpop.eup %2891 }
0x1134   : > { %v1875_v44 = vsel %vm553_vm6, %v2892_v33, 0.0 }
0x1135   : > { %1876 = vadd.xlane.f32.xlu1 %v1875_v44 }
0x1137   : > { %v2894_v48 = vpop.eup %2893 }
0x1138   : > { %v2896_v1 = vpop.eup %2895  ;;  %v1516_v27 = vmul.f32 %v2894_v48, %v2884_v45 }
0x1146   : > { %1887 = vrot.lane.b32.xlu1 %v1885_v37, %s2934_s14  ;;  %v1515_v37 = vmul.f32 %v2896_v1, %v2882_v40 }
0x1147   : > { %1643 = vrot.lane.b32.xlu0 %v1520_v17, %s2934_s14 }
0x1148   : > { %v1519_v28 = vpack.c.bf16 %v1516_v27, %v1515_v37  ;;  %v2807_v37 = vld [vmem:[%s3601_s5 + $0x34] ss:$8 sps:$4 sm:$0xff]  }
0x11b2   : > { %v1751_v6 = vpop.xlane.xlu0 %1750 }
0x11b3   : > { %2897 = vrcp.f32 %v1751_v6 }
0x11b6   : > { %v1754_v10 = vpop.xlane.xlu0 %1753 }
0x11b7   : > { %2899 = vrcp.f32 %v1754_v10 }
0x11ba   : > { %v1874_v23 = vpop.xlane.xlu0 %1873 }
0x11bb   : > { %2901 = vrcp.f32 %v1874_v23 }
0x11be   : > { %v1877_v26 = vpop.xlane.xlu1 %1876  ;;  %v1644_v11 = vpop.permute.xlu0 %1643 }
0x11bf   : > { %2903 = vrcp.f32 %v1877_v26  ;;  %2705 = vmatpush3.bf16.msra.mxu1 %v1644_v11  ;;  %v2805_v11 = vld [vmem:[%s3601_s5 + $0x30] ss:$8 sps:$4 sm:$0xff]  }
0x11c0   : > { %2716 = vmatprep.subr.bf16.mxu1 %v2931_v15  ;;  %v2898_v50 = vpop.eup %2897 }
0x11c1   : > { %v1757_v29 = vmul.f32 %v2898_v50, %v2886_v14  ;;  %v2808_v50 = vld [vmem:[%s3601_s5 + $0x20] ss:$8 sps:$4 sm:$0xff]  }
0x11c2   : > { %2707 = vmatmul.mubr.msk.bf16.vlgmr.msra.gmra.mxu1 %vm553_vm6, %v1519_v28  ;;  %v1888_v32 = vpop.permute.xlu1 %1887  ;;  %v2810_v28 = vld [vmem:[%s3601_s5 + $0x24] ss:$8 sps:$4 sm:$0xff]  }
0x11c3   : > { %2717 = vmatpush3.bf16.msra.mxu1 %v1765_v0  ;;  %2718 = vmatprep.mubr.msk.bf16.mxu1 %vm2932_vm1, %v2931_v15 }
0x11c4   : > { %v2900_v17 = vpop.eup %2899  ;;  %2728 = vmatprep.subr.bf16.mxu1 %v2931_v15 }
0x11c5   : > { %v1758_v31 = vmul.f32 %v2900_v17, %v2888_v51  ;;  %v2003_v51 = vrot.slane %v3342_v21, %v1076_v9 }
0x11c7   : > { %v1761_v12 = vpack.c.bf16 %v1758_v31, %v1757_v29 }
0x11c8   : > { %v2902_v58 = vpop.eup %2901 }
0x11c9   : > { %v1880_v35 = vmul.f32 %v2902_v58, %v2890_v43 }
0x11ca   : > { %2719 = vmatmul.mubr.msk.bf16.vlgmr.msra.gmra.mxu1 %vm553_vm6, %v1761_v12 }
0x11cb   : > { %2729 = vmatpush3.bf16.msra.mxu1 %v1888_v32  ;;  %2730 = vmatprep.mubr.msk.bf16.mxu1 %vm2932_vm1, %v2931_v15 }
0x11cc   : > { %v2904_v34 = vpop.eup %2903  ;;  %2098 = vmatprep.subr.bf16.mxu1 %v2807_v37 }
0x11cd   : > { %v1881_v2 = vmul.f32 %v2904_v34, %v2892_v33 }
0x11cf   : > { %v1884_v36 = vpack.c.bf16 %v1881_v2, %v1880_v35  ;;  %v2035_v2 = vrot.slane %v3342_v21, %v1108_v52  ;;  %v2811_v52 = vld [vmem:[%s3603_s7 + $0x78] sm:$0xff]  }
0x11d2   : > { %2731 = vmatmul.mubr.msk.bf16.vlgmr.msra.gmra.mxu1 %vm553_vm6, %v1884_v36 }
0x11d3   : > { %2118 = vmatprep.mubr.bf16.mxu1 %v2935_v22  ;;  %2099 = vmatpush1.bf16.msra.mxu1 %v2805_v11 }
0x11d4   : > { %2100 = vmatprep.subr.bf16.mxu1 %v2810_v28 }
0x11d7   : > { %2101 = vmatpush1.bf16.msra.mxu1 %v2808_v50 }
0x11d8   : > { %2762 = vmatprep.subr.bf16.mxu1 %v2931_v15 }
0x1282   : > { %v1683_v40 = vpop.f32.mrf.mxu1 }
0x1283   : > { %v1684_v61 = vadd.f32 %v1683_v40, %v3437_v5  ;;  %v2041_v40 = vrot.slane %v3342_v21, %v1114_v54  ;;  %v2812_v54 = vld [vmem:[%s3603_s7 + $0x70] sm:$0xff]  }
0x1284   : > { %v2708_v42 = vpop.f32.mrf.mxu1 }
0x1286   : > { %v1686_v45 = vpop.f32.mrf.mxu1 }
0x1287   : > { %v1687_v62 = vadd.f32 %v1686_v45, %v3439_v18 }
0x1288   : > { %v2709_v46 = vpop.f32.mrf.mxu1 }
0x128a   : > { %v1804_v53 = vpop.f32.mrf.mxu1 }
0x128b   : > { %v1811_v7 = vadd.f32 %v1804_v53, %v1684_v61  ;;  %v2817_v61 = vld [vmem:[%s3603_s7 + $0x48] sm:$0xff]  }
0x128c   : > { %v2720_v22 = vpop.f32.mrf.mxu1 }
0x128d   : > { %v2813_v22 = vld [vmem:[%s3603_s7 + $0x68] sm:$0xff]  }
0x128e   : > { %v1807_v49 = vpop.f32.mrf.mxu1 }
0x128f   : > { %v1812_v13 = vadd.f32 %v1807_v49, %v1687_v62  ;;  %v2814_v49 = vld [vmem:[%s3603_s7 + $0x60] sm:$0xff]  }
0x1290   : > { %v2721_v56 = vpop.f32.mrf.mxu1  ;;  %v2818_v62 = vld [vmem:[%s3603_s7 + $0x40] sm:$0xff]  }
0x1291   : > { %v2815_v56 = vld [vmem:[%s3603_s7 + $0x58] sm:$0xff]  }
0x1292   : > { %v1927_v57 = vpop.f32.mrf.mxu1 }
0x1293   : > { %v1934_v55 = vadd.f32 %v1927_v57, %v1811_v7  ;;  %v2816_v57 = vld [vmem:[%s3603_s7 + $0x50] sm:$0xff]  }
0x1294   : > { %v2732_v63 = vpop.f32.mrf.mxu1 }
0x1295   : > { %v2491_v63 = vld [vmem:[%s3602_s6 + $0x2] sm:$0x3] }
0x1296   : > { %v1930_v8 = vpop.f32.mrf.mxu1  ;;  %v2056_v7 = vrot.slane %v2491_v63, %v3036_v25 }
0x1297   : > { %v1935_v59 = vadd.f32 %v1930_v8, %v1812_v13 }
0x1298   : > { %v2733_v14 = vpop.f32.mrf.mxu1 }
0x1299   : > { %v1941_v16 = vpack.c.bf16 %v1935_v59, %v1934_v55 }
0x129b   : > { %2739 = vmatmul.mubr.msk.bf16.vlgmr.msra.gmra.mxu0 %vm391_vm0, %v1941_v16 }
0x129c   : > { %2758 = vmatprep.mubr.msk.bf16.mxu0 %vm2932_vm1, %v2931_v15  ;;  %2743 = vmatpush3.bf16.msra.mxu0 %v2811_v52  ;;  %v2523_v52 = vld [vmem:[%s3604_s8 + $0x10] sm:$0xff] }
0x129d   : > { %2744 = vmatprep.subr.bf16.mxu0 %v2931_v15 }
0x12a0   : > { %2745 = vmatpush3.bf16.msra.mxu0 %v2812_v54 }
0x12a1   : > { %2746 = vmatprep.subr.bf16.mxu0 %v2931_v15 }
0x12a4   : > { %2747 = vmatpush3.bf16.msra.mxu0 %v2813_v22 }
0x12a5   : > { %2748 = vmatprep.subr.bf16.mxu0 %v2931_v15 }
0x12a8   : > { %2749 = vmatpush3.bf16.msra.mxu0 %v2814_v49  ;;  %v2291_v49 = vrot.slane %v2523_v52, %v3036_v25 }
0x12a9   : > { %2750 = vmatprep.subr.bf16.mxu0 %v2931_v15 }
0x12ac   : > { %2751 = vmatpush3.bf16.msra.mxu0 %v2815_v56 }
0x12ad   : > { %2752 = vmatprep.subr.bf16.mxu0 %v2931_v15 }
0x12b0   : > { %2753 = vmatpush3.bf16.msra.mxu0 %v2816_v57 }
0x12b1   : > { %2754 = vmatprep.subr.bf16.mxu0 %v2931_v15 }
0x12b4   : > { %2755 = vmatpush3.bf16.msra.mxu0 %v2817_v61  ;;  %v2297_v61 = vrot.slane %v2523_v52, %v3046_v30 }
0x12b5   : > { %2756 = vmatprep.subr.bf16.mxu0 %v2931_v15 }
0x12b8   : > { %2757 = vmatpush3.bf16.msra.mxu0 %v2818_v62 }
0x135b   : > { %v1991_v5 = vpop.f32.mrf.mxu0 }
0x135c   : > { %v1998_v18 = vadd.f32 %v1991_v5, %v3318_v60 }
0x135d   : > { %v2740_v3 = vpop.f32.mrf.mxu0 }
0x135e   : > { %v3495_v43 = vadd.f32 %v2003_v51, %v1998_v18 }
0x135f   : > { %v1994_v41 = vpop.f32.mrf.mxu0 }
0x1360   : > { %v1999_v33 = vadd.f32 %v1994_v41, %v3323_v4  ;;  %v2006_v44 = vsel %vm391_vm0, %v3495_v43, 0.0 }
0x1361   : > { %2007 = vadd.xlane.f32.xlu0 %v2006_v44  ;;  %v2741_v19 = vpop.f32.mrf.mxu0  ;;  %v2060_v44 = vrot.slane %v2491_v63, %v3046_v30 }
0x1362   : > { %v3500_v20 = vadd.f32 %v2003_v51, %v1999_v33 }
0x1364   : > { %v2009_v6 = vsel %vm391_vm0, %v3500_v20, 0.0 }
0x1365   : > { %2010 = vadd.xlane.f32.xlu1 %v2009_v6 }
0x13ea   : > { %v2008_v9 = vpop.xlane.xlu0 %2007 }
0x13eb   : > { %v2012_v10 = vmul.f32 0.03125, %v2008_v9 }
0x13ed   : > { %v2014_v60 = vsub.f32 %v3495_v43, %v2012_v10 }
0x13ee   : > { %v2011_v48 = vpop.xlane.xlu1 %2010 }
0x13ef   : > { %v2013_v0 = vmul.f32 0.03125, %v2011_v48  ;;  %v2016_v23 = vmul.f32 %v2014_v60, %v2014_v60 }
0x13f1   : > { %v2015_v4 = vsub.f32 %v3500_v20, %v2013_v0  ;;  %v2018_v1 = vsel %vm391_vm0, %v2016_v23, 0.0 }
0x13f2   : > { %2019 = vadd.xlane.f32.xlu0 %v2018_v1  ;;  %v2257_v1 = vrot.slane %v3342_v21, %v1327_v47 }
0x13f3   : > { %v2017_v27 = vmul.f32 %v2015_v4, %v2015_v4 }
0x13f5   : > { %v2021_v26 = vsel %vm391_vm0, %v2017_v27, 0.0 }
0x13f6   : > { %2022 = vadd.xlane.f32.xlu0 %v2021_v26 }
0x147b   : > { %v2020_v17 = vpop.xlane.xlu0 %2019 }
0x147c   : > { %v2024_v29 = vmul.f32 0.03125, %v2020_v17 }
0x147e   : > { %v2026_v31 = vadd.f32 1e-06, %v2024_v29 }
0x147f   : > { %v2023_v12 = vpop.xlane.xlu0 %2022 }
0x1480   : > { %2905 = vrsqrt.f32 %v2026_v31  ;;  %v2025_v58 = vmul.f32 0.03125, %v2023_v12 }
0x1482   : > { %v2027_v32 = vadd.f32 1e-06, %v2025_v58 }
0x1484   : > { %2907 = vrsqrt.f32 %v2027_v32 }
0x148d   : > { %v2906_v34 = vpop.eup %2905 }
0x148e   : > { %v2030_v35 = vmul.f32 %v2906_v34, %v2014_v60 }
0x1490   : > { %v2036_v39 = vmul.f32 %v2035_v2, %v2030_v35 }
0x1491   : > { %v2908_v36 = vpop.eup %2907 }
0x1492   : > { %v2031_v38 = vmul.f32 %v2908_v36, %v2015_v4  ;;  %v2042_v45 = vadd.f32 %v2041_v40, %v2036_v39  ;;  %v2819_v36 = vld [vmem:[%s3605_s9 + $0x8] sm:$0xff]  }
0x1494   : > { %v2037_v42 = vmul.f32 %v2035_v2, %v2031_v38  ;;  %v2820_v38 = vld [vmem:[%s3605_s9] sm:$0xff]  }
0x1496   : > { %v2043_v46 = vadd.f32 %v2041_v40, %v2037_v42 }
0x1498   : > { %v2044_v53 = vpack.c.bf16 %v2043_v46, %v2042_v45 }
0x149a   : > { %2496 = vmatmul.mubr.msk.bf16.vlgmr.msra.gmra.mxu1 %vm391_vm0, %v2044_v53 }
0x149b   : > { %2766 = vmatprep.mubr.msk.bf16.mxu1 %vm2932_vm1, %v2931_v15  ;;  %2763 = vmatpush3.bf16.msra.mxu1 %v2819_v36 }
0x149c   : > { %2764 = vmatprep.subr.bf16.mxu1 %v2931_v15 }
0x149f   : > { %2765 = vmatpush3.bf16.msra.mxu1 %v2820_v38 }
0x155a   : > { %v2120_v13 = vpop.f32.mrf.mxu1 }
0x155b   : > { %v2121_v8 = vadd.f32 %v2120_v13, %v2056_v7 }
0x155c   : > { %v2122_v55 = vpop.f32.mrf.mxu1 }
0x155d   : > { %v2497_v59 = vmul.f32 -1.442695, %v2121_v8  ;;  %v2123_v10 = vadd.f32 %v2122_v55, %v2060_v44 }
0x155e   : > { %v2124_v14 = vpop.f32.mrf.mxu1 }
0x155f   : > { %2909 = vpow2.f32 %v2497_v59  ;;  %v2125_v16 = vadd.f32 %v2124_v14, %v2056_v7 }
0x1560   : > { %v2126_v19 = vpop.f32.mrf.mxu1 }
0x1561   : > { %v2498_v51 = vmul.f32 -1.442695, %v2125_v16  ;;  %v2127_v48 = vadd.f32 %v2126_v19, %v2060_v44 }
0x1563   : > { %2911 = vpow2.f32 %v2498_v51 }
0x156c   : > { %v2910_v5 = vpop.eup %2909 }
0x156d   : > { %v2135_v18 = vadd.f32 1.0, %v2910_v5 }
0x156f   : > { %2913 = vrcp.f32 %v2135_v18 }
0x1570   : > { %v2912_v3 = vpop.eup %2911 }
0x1571   : > { %v2136_v41 = vadd.f32 1.0, %v2912_v3 }
0x1573   : > { %2915 = vrcp.f32 %v2136_v41 }
0x157c   : > { %v2914_v33 = vpop.eup %2913 }
0x157d   : > { %v2141_v6 = vmul.f32 %v2914_v33, %v2121_v8 }
0x157f   : > { %v2143_v0 = vmul.f32 %v2141_v6, %v2123_v10 }
0x1580   : > { %v2916_v9 = vpop.eup %2915 }
0x1581   : > { %v2142_v60 = vmul.f32 %v2916_v9, %v2125_v16 }
0x1583   : > { %v2144_v23 = vmul.f32 %v2142_v60, %v2127_v48 }
0x1585   : > { %v2162_v4 = vpack.c.bf16 %v2144_v23, %v2143_v0 }
0x1587   : > { %2759 = vmatmul.mubr.bf16.vlgmr.msra.gmra.mxu0 %v2162_v4 }
0x1647   : > { %v2245_v27 = vpop.f32.mrf.mxu0 }
0x1648   : > { %v2252_v26 = vadd.f32 %v2245_v27, %v3495_v43 }
0x1649   : > { %v2760_v11 = vpop.f32.mrf.mxu0 }
0x164a   : > { %v2258_v37 = vadd.f32 %v2257_v1, %v2252_v26 }
0x164b   : > { %v2248_v28 = vpop.f32.mrf.mxu0 }
0x164c   : > { %v2253_v50 = vadd.f32 %v2248_v28, %v3500_v20  ;;  %v2262_v17 = vsel %vm391_vm0, %v2258_v37, 0.0 }
0x164d   : > { %2263 = vadd.xlane.f32.xlu1 %v2262_v17  ;;  %v2761_v29 = vpop.f32.mrf.mxu0 }
0x164e   : > { %v2259_v31 = vadd.f32 %v2257_v1, %v2253_v50 }
0x1650   : > { %v2265_v12 = vsel %vm391_vm0, %v2259_v31, 0.0 }
0x1651   : > { %2266 = vadd.xlane.f32.xlu0 %v2265_v12 }
0x16d6   : > { %v2264_v58 = vpop.xlane.xlu1 %2263 }
0x16d7   : > { %v2268_v24 = vmul.f32 0.03125, %v2264_v58 }
0x16d9   : > { %v2270_v32 = vsub.f32 %v2258_v37, %v2268_v24 }
0x16da   : > { %v2267_v47 = vpop.xlane.xlu0 %2266 }
0x16db   : > { %v2269_v21 = vmul.f32 0.03125, %v2267_v47  ;;  %v2272_v34 = vmul.f32 %v2270_v32, %v2270_v32 }
0x16dd   : > { %v2271_v43 = vsub.f32 %v2259_v31, %v2269_v21  ;;  %v2274_v35 = vsel %vm391_vm0, %v2272_v34, 0.0 }
0x16de   : > { %2275 = vadd.xlane.f32.xlu1 %v2274_v35 }
0x16df   : > { %v2273_v2 = vmul.f32 %v2271_v43, %v2271_v43 }
0x16e1   : > { %v2277_v20 = vsel %vm391_vm0, %v2273_v2, 0.0 }
0x16e2   : > { %2278 = vadd.xlane.f32.xlu0 %v2277_v20 }
0x1767   : > { %v2276_v39 = vpop.xlane.xlu1 %2275 }
0x1768   : > { %v2280_v40 = vmul.f32 0.03125, %v2276_v39 }
0x176a   : > { %v2282_v42 = vadd.f32 1e-06, %v2280_v40 }
0x176b   : > { %v2279_v45 = vpop.xlane.xlu0 %2278 }
0x176c   : > { %2917 = vrsqrt.f32 %v2282_v42  ;;  %v2281_v46 = vmul.f32 0.03125, %v2279_v45 }
0x176e   : > { %v2283_v53 = vadd.f32 1e-06, %v2281_v46 }
0x1770   : > { %2919 = vrsqrt.f32 %v2283_v53 }
0x1779   : > { %v2918_v54 = vpop.eup %2917 }
0x177a   : > { %v2286_v22 = vmul.f32 %v2918_v54, %v2270_v32 }
0x177c   : > { %v2292_v57 = vmul.f32 %v2291_v49, %v2286_v22 }
0x177d   : > { %v2920_v56 = vpop.eup %2919 }
0x177e   : > { %v2287_v15 = vmul.f32 %v2920_v56, %v2271_v43  ;;  %v2298_v63 = vadd.f32 %v2297_v61, %v2292_v57 }
0x1780   : > { %v2293_v62 = vmul.f32 %v2291_v49, %v2287_v15 }
0x1782   : > { %v2299_v7 = vadd.f32 %v2297_v61, %v2293_v62 }
0x1784   : > { %v2300_v13 = vpack.c.bf16 %v2299_v7, %v2298_v63 }
0x1786   : > { %2767 = vmatmul.mubr.msk.bf16.vlgmr.msra.gmra.mxu1 %vm391_vm0, %v2300_v13 }
0x1846   : > { %v2354_v8 = vpop.f32.mrf.mxu1 }
0x1847   : > { %2361 = vst [vmem:[%s361_s12] sm:$0xff] %v2354_v8 }
0x1848   : > { %v2768_v55 = vpop.f32.mrf.mxu1 }
0x184a   : > { %v2357_v25 = vpop.f32.mrf.mxu1 }
0x184b   : > { %2362 = vst [vmem:[%s361_s12 + $0x8] sm:$0xff] %v2357_v25 }
0x184c   : > { %v2769_v59 = vpop.f32.mrf.mxu1 }
0x184d PF: > { %s20_s13 = sadd.s32 1, %s2929_s13  }
0x184e   : > { %p17_p4 = scmp.ge.s32.totalorder %s20_s13, 4  }
0x1850   :  { %19 = sbr.rel (!%p17_p4) target bundleno = 1 (0x1), region = 98 }

</bundles_post_ra>
